<compile_context>
chip_gen: v5e
topology: v5e:2x2
jax: 0.10.0
libtpu: 0.0.40
codegen_flags: <defaults>
</compile_context>

<pallas_src>
import functools
import math

import jax
import jax.numpy as jnp
from jax import lax
from jax.experimental import pallas as pl
from jax.experimental.pallas import tpu as pltpu

LANE = 128


def _round_up(x, m):
    return (x + m - 1) // m * m


# ----------------------------------------------------------------------------
# Pallas kernels
# ----------------------------------------------------------------------------
def _conv3x3_kernel(*refs, H, W, apply_in_affine):
    """Implicit-GEMM 3x3 'same' conv for one batch element.

    Input is a flattened zero-bordered canvas (CR, Cin) where CR >= (H+2)*(W+2).
    Optionally applies the previous layer's BatchNorm scale/shift + ReLU to the
    operand tile (re-zeroing the halo with the interior mask).  Emits:
      y : (1, CR, Cout) canvas (zero border + conv output interior, pre-BN)
      s : (1, 1, Cout) per-channel sum        (for this layer's BatchNorm)
      ss: (1, 1, Cout) per-channel sum of squares
    """
    if apply_in_affine:
        (x_ref, w_ref, b_ref, m_ref, scale_ref, shift_ref,
         y_ref, s_ref, ss_ref, xs_ref) = refs
    else:
        (x_ref, w_ref, b_ref, m_ref,
         y_ref, s_ref, ss_ref, xs_ref) = refs

    Wp = W + 2
    nrows = H * Wp                       # implicit-GEMM rows (2 garbage cols/row)
    cin = xs_ref.shape[-1]
    cout = y_ref.shape[-1]

    x = x_ref[0]                                              # (CR, Cin) f32
    if apply_in_affine:
        # fused previous-layer BN scale/shift + ReLU, applied on load; the
        # interior mask re-zeroes the spatial halo (affine(0) is not 0).
        x = jnp.maximum(x * scale_ref[...] + shift_ref[...], 0.0) * m_ref[...]
    xs_ref[...] = x                                           # VMEM staging

    acc = jnp.zeros((nrows, cout), jnp.float32)
    for dy in range(3):
        for dx in range(3):
            t = dy * 3 + dx
            patch = xs_ref[pl.ds(dy * Wp + dx, nrows), :].astype(jnp.bfloat16)
            acc = acc + jnp.dot(patch, w_ref[pl.ds(t * cin, cin), :],
                                preferred_element_type=jnp.float32)

    # bias, then zero the 2 wrap-around garbage columns per output row (the
    # interior mask shifted by Wp+1 is exactly the valid-output mask).
    acc = (acc + b_ref[...]) * m_ref[pl.ds(Wp + 1, nrows), :]

    # per-channel BatchNorm partial statistics for this batch element
    s_ref[0] = jnp.sum(acc, axis=0, keepdims=True)
    ss_ref[0] = jnp.sum(acc * acc, axis=0, keepdims=True)

    # write the output as a zero-bordered canvas so the next conv consumes it
    # directly (masked garbage lands exactly on border slots -> stays zero).
    y_ref[...] = jnp.zeros(y_ref.shape, y_ref.dtype)
    y_ref[0, pl.ds(Wp + 1, nrows), :] = acc


def _affine_relu_kernel(x_ref, scale_ref, shift_ref, o_ref):
    o_ref[...] = jnp.maximum(x_ref[...] * scale_ref[...] + shift_ref[...], 0.0)


# ----------------------------------------------------------------------------
# Wrappers
# ----------------------------------------------------------------------------
def _conv3x3(canvas, w_mat, bias, mask, scale, shift, H, W, apply_in_affine):
    B, CR, cin_p = canvas.shape
    cout_p = w_mat.shape[1]

    in_specs = [
        pl.BlockSpec((1, CR, cin_p), lambda b: (b, 0, 0)),
        pl.BlockSpec((9 * cin_p, cout_p), lambda b: (0, 0)),
        pl.BlockSpec((1, cout_p), lambda b: (0, 0)),
        pl.BlockSpec((CR, 1), lambda b: (0, 0)),
    ]
    args = [canvas, w_mat, bias, mask]
    if apply_in_affine:
        in_specs += [pl.BlockSpec((1, cin_p), lambda b: (0, 0)),
                     pl.BlockSpec((1, cin_p), lambda b: (0, 0))]
        args += [scale, shift]

    kernel = functools.partial(_conv3x3_kernel, H=H, W=W,
                               apply_in_affine=apply_in_affine)
    return pl.pallas_call(
        kernel,
        out_shape=(jax.ShapeDtypeStruct((B, CR, cout_p), jnp.float32),
                   jax.ShapeDtypeStruct((B, 1, cout_p), jnp.float32),
                   jax.ShapeDtypeStruct((B, 1, cout_p), jnp.float32)),
        grid_spec=pltpu.PrefetchScalarGridSpec(
            num_scalar_prefetch=0,
            grid=(B,),
            in_specs=in_specs,
            out_specs=[pl.BlockSpec((1, CR, cout_p), lambda b: (b, 0, 0)),
                       pl.BlockSpec((1, 1, cout_p), lambda b: (b, 0, 0)),
                       pl.BlockSpec((1, 1, cout_p), lambda b: (b, 0, 0))],
            scratch_shapes=[pltpu.VMEM((CR, cin_p), jnp.float32)]),
        compiler_params=pltpu.CompilerParams(
            dimension_semantics=("parallel",)),
    )(*args)


def _affine_relu(x, scale, shift):
    B, CR, cp = x.shape
    return pl.pallas_call(
        _affine_relu_kernel,
        out_shape=jax.ShapeDtypeStruct((B, CR, cp), jnp.float32),
        grid_spec=pltpu.PrefetchScalarGridSpec(
            num_scalar_prefetch=0,
            grid=(B,),
            in_specs=[pl.BlockSpec((1, CR, cp), lambda b: (b, 0, 0)),
                      pl.BlockSpec((1, cp), lambda b: (0, 0)),
                      pl.BlockSpec((1, cp), lambda b: (0, 0))],
            out_specs=pl.BlockSpec((1, CR, cp), lambda b: (b, 0, 0))),
        compiler_params=pltpu.CompilerParams(
            dimension_semantics=("parallel",)),
    )(x, scale, shift)


def _bn_scale_shift(s, ss, count, gamma, beta, eps=1e-5):
    """Training-mode BatchNorm: biased batch variance, eps=1e-5."""
    mean = jnp.sum(s, axis=(0, 1)) / count
    var = jnp.maximum(jnp.sum(ss, axis=(0, 1)) / count - mean * mean, 0.0)
    scale = gamma * lax.rsqrt(var + eps)
    shift = beta - mean * scale
    return scale.reshape(1, -1), shift.reshape(1, -1)


def _canvas_rows(H, W):
    return _round_up((H + 2) * (W + 2) + 2, 8)


def _to_canvas(x_nhwc):
    """NHWC -> flattened zero-bordered canvas (B, CR, C)."""
    B, H, W, C = x_nhwc.shape
    Hp, Wp = H + 2, W + 2
    cr = _canvas_rows(H, W)
    c = jnp.pad(x_nhwc, ((0, 0), (1, 1), (1, 1), (0, 0))).reshape(B, Hp * Wp, C)
    return jnp.pad(c, ((0, 0), (0, cr - Hp * Wp), (0, 0)))


def _interior_mask(H, W):
    Hp, Wp = H + 2, W + 2
    cr = _canvas_rows(H, W)
    idx = jnp.arange(cr)
    r, c = idx // Wp, idx % Wp
    m = ((r >= 1) & (r <= H) & (c >= 1) & (c <= W)).astype(jnp.float32)
    return m.reshape(cr, 1)


# ----------------------------------------------------------------------------
# encoder_block_yb_v1 forward (first_block=False, dropout=False, basic conv)
# ----------------------------------------------------------------------------
@jax.jit
def encoder_block_forward(params, x_nchw):
    x = jnp.transpose(x_nchw.astype(jnp.float32), (0, 2, 3, 1))       # NHWC
    B, H2, W2, cin = x.shape
    H, W = H2 // 2, W2 // 2

    cin_p = params["w1"].shape[0] // 9        # channel-padded Cin of conv1
    cp = params["w1"].shape[1]                # channel-padded Cout
    cout = params["g1"].shape[0]              # real Cout

    # ---- MaxPool2d(2, 2) (memory-bound XLA glue) ----
    pooled = lax.reduce_window(x, -jnp.inf, lax.max,
                               (1, 2, 2, 1), (1, 2, 2, 1), "VALID")
    pooled = jnp.pad(pooled, ((0, 0), (0, 0), (0, 0), (0, cin_p - cin)))

    canvas0 = _to_canvas(pooled)                           # (B, CR, cin_p)
    mask = _interior_mask(H, W)                            # (CR, 1)

    b1 = jnp.pad(params["b1"], (0, cp - cout)).reshape(1, cp)
    b2 = jnp.pad(params["b2"], (0, cp - cout)).reshape(1, cp)
    g1 = jnp.pad(params["g1"], (0, cp - cout), constant_values=1.0)
    bt1 = jnp.pad(params["bt1"], (0, cp - cout))
    g2 = jnp.pad(params["g2"], (0, cp - cout), constant_values=1.0)
    bt2 = jnp.pad(params["bt2"], (0, cp - cout))

    count = B * H * W

    # conv1 (emits its own BN statistics)
    y1, s1, ss1 = _conv3x3(canvas0, params["w1"], b1, mask,
                           None, None, H, W, apply_in_affine=False)
    sc1, sh1 = _bn_scale_shift(s1, ss1, count, g1, bt1)

    # conv2, with conv1's BN + ReLU fused into the operand load
    y2, s2, ss2 = _conv3x3(y1, params["w2"], b2, mask,
                           sc1, sh1, H, W, apply_in_affine=True)
    sc2, sh2 = _bn_scale_shift(s2, ss2, count, g2, bt2)

    # final BN + ReLU (gridded, lane-dense affine kernel)
    z = _affine_relu(y2, sc2, sh2)                         # (B, CR, cp)

    Hp, Wp = H + 2, W + 2
    z = z[:, :Hp * Wp, :].reshape(B, Hp, Wp, cp)[:, 1:H + 1, 1:W + 1, :cout]
    return jnp.transpose(z, (0, 3, 1, 2))                  # NCHW


# ----------------------------------------------------------------------------
# Deterministic parameter initialization (PyTorch-style defaults)
# ----------------------------------------------------------------------------
def init_encoder_block_params(key, ch_in, ch_out):
    cin_p = _round_up(max(ch_in, LANE), LANE)
    cp = _round_up(max(ch_out, LANE), LANE)
    k1, k2, k3, k4 = jax.random.split(key, 4)

    def conv_params(kw, kb, cin, cinp):
        bound = 1.0 / math.sqrt(cin * 9)                   # kaiming_uniform(a=sqrt(5))
        w = jax.random.uniform(kw, (3, 3, cin, ch_out), jnp.float32,
                               -bound, bound)
        w_pad = jnp.zeros((3, 3, cinp, cp), jnp.float32)
        w_pad = w_pad.at[:, :, :cin, :ch_out].set(w)
        w_mat = w_pad.reshape(9 * cinp, cp).astype(jnp.bfloat16)   # MXU operand
        b = jax.random.uniform(kb, (ch_out,), jnp.float32, -bound, bound)
        return w_mat, b

    w1, b1 = conv_params(k1, k2, ch_in, cin_p)
    w2, b2 = conv_params(k3, k4, ch_out, cp)
    return {"w1": w1, "b1": b1,
            "g1": jnp.ones((ch_out,), jnp.float32),
            "bt1": jnp.zeros((ch_out,), jnp.float32),
            "w2": w2, "b2": b2,
            "g2": jnp.ones((ch_out,), jnp.float32),
            "bt2": jnp.zeros((ch_out,), jnp.float32)}


if __name__ == "__main__":
    B, C_IN, H_IMG, W_IMG = 2, 4, 16, 16
    C_OUT = 32

    key = jax.random.PRNGKey(0)
    kx, kp = jax.random.split(key)
    x = jax.random.normal(kx, (B, C_IN, H_IMG, W_IMG), jnp.float32)
    params = init_encoder_block_params(kp, C_IN, C_OUT)

    out = encoder_block_forward(params, x)
    out = jax.block_until_ready(out)

    assert out.shape == (B, C_OUT, H_IMG // 2, W_IMG // 2), out.shape
    assert bool(jnp.all(jnp.isfinite(out)))
    assert bool(jnp.all(out >= 0.0))          # final ReLU
    print("KERNEL_OK")
</pallas_src>

<mosaic_0001>
module attributes {stable_mosaic.version = 11 : i64} {
  func.func @_conv3x3_kernel(%arg0: i32, %arg1: memref<1x104x128xf32, #tpu.memory_space<vmem>>, %arg2: memref<1152x128xbf16, #tpu.memory_space<vmem>>, %arg3: memref<1x128xf32, #tpu.memory_space<vmem>>, %arg4: memref<104x1xf32, #tpu.memory_space<vmem>>, %arg5: memref<1x104x128xf32, #tpu.memory_space<vmem>>, %arg6: memref<1x1x128xf32, #tpu.memory_space<vmem>>, %arg7: memref<1x1x128xf32, #tpu.memory_space<vmem>>, %arg8: memref<104x128xf32, #tpu.memory_space<vmem>>) attributes {dimension_semantics = [#tpu.dimension_semantics<parallel>], iteration_bounds = array<i64: 2>, scalar_prefetch = 0 : i64, scratch_operands = 1 : i64, tpu.core_type = #tpu.core_type<tc>, window_params = [{transform_indices = @transform_0, window_bounds = array<i64: 1, 104, 128>}, {pipeline_mode = #tpu.pipeline_mode<synchronous>, transform_indices = @transform_1, window_bounds = array<i64: 1152, 128>}, {pipeline_mode = #tpu.pipeline_mode<synchronous>, transform_indices = @transform_2, window_bounds = array<i64: 1, 128>}, {pipeline_mode = #tpu.pipeline_mode<synchronous>, transform_indices = @transform_3, window_bounds = array<i64: 104, 1>}, {transform_indices = @transform_4, window_bounds = array<i64: 1, 104, 128>}, {transform_indices = @transform_5, window_bounds = array<i64: 1, 1, 128>}, {transform_indices = @transform_6, window_bounds = array<i64: 1, 1, 128>}]} {
    %c0 = arith.constant 0 : index
    %c0_0 = arith.constant 0 : index
    %c0_1 = arith.constant 0 : index
    %0 = vector.load %arg1[%c0, %c0_0, %c0_1] : memref<1x104x128xf32, #tpu.memory_space<vmem>>, vector<1x104x128xf32>
    %1 = vector.shape_cast %0 : vector<1x104x128xf32> to vector<104x128xf32>
    %c0_2 = arith.constant 0 : index
    %c0_3 = arith.constant 0 : index
    %2 = vector.load %arg8[%c0_2, %c0_3] : memref<104x128xf32, #tpu.memory_space<vmem>>, vector<104x128xf32>
    tpu.vector_store %arg8[%c0_2, %c0_3], %1 {strides = array<i32>} : memref<104x128xf32, #tpu.memory_space<vmem>>, vector<104x128xf32>,
    %cst = arith.constant 0.000000e+00 : f32
    %3 = vector.broadcast %cst : f32 to vector<80x128xf32>
    %c0_4 = arith.constant 0 : index
    %c0_5 = arith.constant 0 : index
    %4 = vector.load %arg8[%c0_4, %c0_5] : memref<104x128xf32, #tpu.memory_space<vmem>>, vector<80x128xf32>
    %5 = arith.truncf %4 : vector<80x128xf32> to vector<80x128xbf16>
    %c0_6 = arith.constant 0 : index
    %c0_7 = arith.constant 0 : index
    %6 = vector.load %arg2[%c0_6, %c0_7] : memref<1152x128xbf16, #tpu.memory_space<vmem>>, vector<128x128xbf16>
    %cst_8 = arith.constant dense<0.000000e+00> : vector<80x128xf32>
    %7 = tpu.matmul %5, %6, %cst_8 {dimension_numbers = #tpu.dot_dimension_numbers<[1], [0], [0], [1], [0, 0, 1, 1], [], []>} : vector<80x128xbf16>, vector<128x128xbf16>, vector<80x128xf32> -> vector<80x128xf32>
    %8 = arith.addf %3, %7 : vector<80x128xf32>
    %c1 = arith.constant 1 : index
    %c0_9 = arith.constant 0 : index
    %9 = vector.load %arg8[%c1, %c0_9] : memref<104x128xf32, #tpu.memory_space<vmem>>, vector<80x128xf32>
    %10 = arith.truncf %9 : vector<80x128xf32> to vector<80x128xbf16>
    %c128 = arith.constant 128 : index
    %c0_10 = arith.constant 0 : index
    %11 = vector.load %arg2[%c128, %c0_10] : memref<1152x128xbf16, #tpu.memory_space<vmem>>, vector<128x128xbf16>
    %cst_11 = arith.constant dense<0.000000e+00> : vector<80x128xf32>
    %12 = tpu.matmul %10, %11, %cst_11 {dimension_numbers = #tpu.dot_dimension_numbers<[1], [0], [0], [1], [0, 0, 1, 1], [], []>} : vector<80x128xbf16>, vector<128x128xbf16>, vector<80x128xf32> -> vector<80x128xf32>
    %13 = arith.addf %8, %12 : vector<80x128xf32>
    %c2 = arith.constant 2 : index
    %c0_12 = arith.constant 0 : index
    %14 = vector.load %arg8[%c2, %c0_12] : memref<104x128xf32, #tpu.memory_space<vmem>>, vector<80x128xf32>
    %15 = arith.truncf %14 : vector<80x128xf32> to vector<80x128xbf16>
    %c256 = arith.constant 256 : index
    %c0_13 = arith.constant 0 : index
    %16 = vector.load %arg2[%c256, %c0_13] : memref<1152x128xbf16, #tpu.memory_space<vmem>>, vector<128x128xbf16>
    %cst_14 = arith.constant dense<0.000000e+00> : vector<80x128xf32>
    %17 = tpu.matmul %15, %16, %cst_14 {dimension_numbers = #tpu.dot_dimension_numbers<[1], [0], [0], [1], [0, 0, 1, 1], [], []>} : vector<80x128xbf16>, vector<128x128xbf16>, vector<80x128xf32> -> vector<80x128xf32>
    %18 = arith.addf %13, %17 : vector<80x128xf32>
    %c10 = arith.constant 10 : index
    %c0_15 = arith.constant 0 : index
    %19 = vector.load %arg8[%c10, %c0_15] : memref<104x128xf32, #tpu.memory_space<vmem>>, vector<80x128xf32>
    %20 = arith.truncf %19 : vector<80x128xf32> to vector<80x128xbf16>
    %c384 = arith.constant 384 : index
    %c0_16 = arith.constant 0 : index
    %21 = vector.load %arg2[%c384, %c0_16] : memref<1152x128xbf16, #tpu.memory_space<vmem>>, vector<128x128xbf16>
    %cst_17 = arith.constant dense<0.000000e+00> : vector<80x128xf32>
    %22 = tpu.matmul %20, %21, %cst_17 {dimension_numbers = #tpu.dot_dimension_numbers<[1], [0], [0], [1], [0, 0, 1, 1], [], []>} : vector<80x128xbf16>, vector<128x128xbf16>, vector<80x128xf32> -> vector<80x128xf32>
    %23 = arith.addf %18, %22 : vector<80x128xf32>
    %c11 = arith.constant 11 : index
    %c0_18 = arith.constant 0 : index
    %24 = vector.load %arg8[%c11, %c0_18] : memref<104x128xf32, #tpu.memory_space<vmem>>, vector<80x128xf32>
    %25 = arith.truncf %24 : vector<80x128xf32> to vector<80x128xbf16>
    %c512 = arith.constant 512 : index
    %c0_19 = arith.constant 0 : index
    %26 = vector.load %arg2[%c512, %c0_19] : memref<1152x128xbf16, #tpu.memory_space<vmem>>, vector<128x128xbf16>
    %cst_20 = arith.constant dense<0.000000e+00> : vector<80x128xf32>
    %27 = tpu.matmul %25, %26, %cst_20 {dimension_numbers = #tpu.dot_dimension_numbers<[1], [0], [0], [1], [0, 0, 1, 1], [], []>} : vector<80x128xbf16>, vector<128x128xbf16>, vector<80x128xf32> -> vector<80x128xf32>
    %28 = arith.addf %23, %27 : vector<80x128xf32>
    %c12 = arith.constant 12 : index
    %c0_21 = arith.constant 0 : index
    %29 = vector.load %arg8[%c12, %c0_21] : memref<104x128xf32, #tpu.memory_space<vmem>>, vector<80x128xf32>
    %30 = arith.truncf %29 : vector<80x128xf32> to vector<80x128xbf16>
    %c640 = arith.constant 640 : index
    %c0_22 = arith.constant 0 : index
    %31 = vector.load %arg2[%c640, %c0_22] : memref<1152x128xbf16, #tpu.memory_space<vmem>>, vector<128x128xbf16>
    %cst_23 = arith.constant dense<0.000000e+00> : vector<80x128xf32>
    %32 = tpu.matmul %30, %31, %cst_23 {dimension_numbers = #tpu.dot_dimension_numbers<[1], [0], [0], [1], [0, 0, 1, 1], [], []>} : vector<80x128xbf16>, vector<128x128xbf16>, vector<80x128xf32> -> vector<80x128xf32>
    %33 = arith.addf %28, %32 : vector<80x128xf32>
    %c20 = arith.constant 20 : index
    %c0_24 = arith.constant 0 : index
    %34 = vector.load %arg8[%c20, %c0_24] : memref<104x128xf32, #tpu.memory_space<vmem>>, vector<80x128xf32>
    %35 = arith.truncf %34 : vector<80x128xf32> to vector<80x128xbf16>
    %c768 = arith.constant 768 : index
    %c0_25 = arith.constant 0 : index
    %36 = vector.load %arg2[%c768, %c0_25] : memref<1152x128xbf16, #tpu.memory_space<vmem>>, vector<128x128xbf16>
    %cst_26 = arith.constant dense<0.000000e+00> : vector<80x128xf32>
    %37 = tpu.matmul %35, %36, %cst_26 {dimension_numbers = #tpu.dot_dimension_numbers<[1], [0], [0], [1], [0, 0, 1, 1], [], []>} : vector<80x128xbf16>, vector<128x128xbf16>, vector<80x128xf32> -> vector<80x128xf32>
    %38 = arith.addf %33, %37 : vector<80x128xf32>
    %c21 = arith.constant 21 : index
    %c0_27 = arith.constant 0 : index
    %39 = vector.load %arg8[%c21, %c0_27] : memref<104x128xf32, #tpu.memory_space<vmem>>, vector<80x128xf32>
    %40 = arith.truncf %39 : vector<80x128xf32> to vector<80x128xbf16>
    %c896 = arith.constant 896 : index
    %c0_28 = arith.constant 0 : index
    %41 = vector.load %arg2[%c896, %c0_28] : memref<1152x128xbf16, #tpu.memory_space<vmem>>, vector<128x128xbf16>
    %cst_29 = arith.constant dense<0.000000e+00> : vector<80x128xf32>
    %42 = tpu.matmul %40, %41, %cst_29 {dimension_numbers = #tpu.dot_dimension_numbers<[1], [0], [0], [1], [0, 0, 1, 1], [], []>} : vector<80x128xbf16>, vector<128x128xbf16>, vector<80x128xf32> -> vector<80x128xf32>
    %43 = arith.addf %38, %42 : vector<80x128xf32>
    %c22 = arith.constant 22 : index
    %c0_30 = arith.constant 0 : index
    %44 = vector.load %arg8[%c22, %c0_30] : memref<104x128xf32, #tpu.memory_space<vmem>>, vector<80x128xf32>
    %45 = arith.truncf %44 : vector<80x128xf32> to vector<80x128xbf16>
    %c1024 = arith.constant 1024 : index
    %c0_31 = arith.constant 0 : index
    %46 = vector.load %arg2[%c1024, %c0_31] : memref<1152x128xbf16, #tpu.memory_space<vmem>>, vector<128x128xbf16>
    %cst_32 = arith.constant dense<0.000000e+00> : vector<80x128xf32>
    %47 = tpu.matmul %45, %46, %cst_32 {dimension_numbers = #tpu.dot_dimension_numbers<[1], [0], [0], [1], [0, 0, 1, 1], [], []>} : vector<80x128xbf16>, vector<128x128xbf16>, vector<80x128xf32> -> vector<80x128xf32>
    %48 = arith.addf %43, %47 : vector<80x128xf32>
    %c0_33 = arith.constant 0 : index
    %c0_34 = arith.constant 0 : index
    %49 = vector.load %arg3[%c0_33, %c0_34] : memref<1x128xf32, #tpu.memory_space<vmem>>, vector<1x128xf32>
    %50 = vector.broadcast %49 : vector<1x128xf32> to vector<80x128xf32>
    %51 = arith.addf %48, %50 : vector<80x128xf32>
    %c11_35 = arith.constant 11 : index
    %c0_36 = arith.constant 0 : index
    %52 = vector.load %arg4[%c11_35, %c0_36] : memref<104x1xf32, #tpu.memory_space<vmem>>, vector<80x1xf32>
    %53 = vector.broadcast %52 : vector<80x1xf32> to vector<80x128xf32>
    %54 = arith.mulf %51, %53 : vector<80x128xf32>
    %cst_37 = arith.constant dense<0.000000e+00> : vector<128xf32>
    %55 = vector.multi_reduction <add>, %54, %cst_37 [0] : vector<80x128xf32> to vector<128xf32>
    %56 = vector.shape_cast %55 : vector<128xf32> to vector<1x128xf32>
    %c0_38 = arith.constant 0 : index
    %c0_39 = arith.constant 0 : index
    %c0_40 = arith.constant 0 : index
    %57 = vector.load %arg6[%c0_38, %c0_39, %c0_40] : memref<1x1x128xf32, #tpu.memory_space<vmem>>, vector<1x1x128xf32>
    %58 = vector.shape_cast %57 : vector<1x1x128xf32> to vector<1x128xf32>
    %59 = vector.shape_cast %56 : vector<1x128xf32> to vector<1x1x128xf32>
    tpu.vector_store %arg6[%c0_38, %c0_39, %c0_40], %59 {strides = array<i32>} : memref<1x1x128xf32, #tpu.memory_space<vmem>>, vector<1x1x128xf32>,
    %60 = arith.mulf %54, %54 : vector<80x128xf32>
    %cst_41 = arith.constant dense<0.000000e+00> : vector<128xf32>
    %61 = vector.multi_reduction <add>, %60, %cst_41 [0] : vector<80x128xf32> to vector<128xf32>
    %62 = vector.shape_cast %61 : vector<128xf32> to vector<1x128xf32>
    %c0_42 = arith.constant 0 : index
    %c0_43 = arith.constant 0 : index
    %c0_44 = arith.constant 0 : index
    %63 = vector.load %arg7[%c0_42, %c0_43, %c0_44] : memref<1x1x128xf32, #tpu.memory_space<vmem>>, vector<1x1x128xf32>
    %64 = vector.shape_cast %63 : vector<1x1x128xf32> to vector<1x128xf32>
    %65 = vector.shape_cast %62 : vector<1x128xf32> to vector<1x1x128xf32>
    tpu.vector_store %arg7[%c0_42, %c0_43, %c0_44], %65 {strides = array<i32>} : memref<1x1x128xf32, #tpu.memory_space<vmem>>, vector<1x1x128xf32>,
    %cst_45 = arith.constant 0.000000e+00 : f32
    %66 = vector.broadcast %cst_45 : f32 to vector<1x104x128xf32>
    %c0_46 = arith.constant 0 : index
    %c0_47 = arith.constant 0 : index
    %c0_48 = arith.constant 0 : index
    %67 = vector.load %arg5[%c0_46, %c0_47, %c0_48] : memref<1x104x128xf32, #tpu.memory_space<vmem>>, vector<1x104x128xf32>
    tpu.vector_store %arg5[%c0_46, %c0_47, %c0_48], %66 {strides = array<i32>} : memref<1x104x128xf32, #tpu.memory_space<vmem>>, vector<1x104x128xf32>,
    %c0_49 = arith.constant 0 : index
    %c11_50 = arith.constant 11 : index
    %c0_51 = arith.constant 0 : index
    %68 = vector.load %arg5[%c0_49, %c11_50, %c0_51] : memref<1x104x128xf32, #tpu.memory_space<vmem>>, vector<1x80x128xf32>
    %69 = vector.shape_cast %68 : vector<1x80x128xf32> to vector<80x128xf32>
    %70 = vector.shape_cast %54 : vector<80x128xf32> to vector<1x80x128xf32>
    tpu.vector_store %arg5[%c0_49, %c11_50, %c0_51], %70 {strides = array<i32>} : memref<1x104x128xf32, #tpu.memory_space<vmem>>, vector<1x80x128xf32>,
    return
  }
  func.func @transform_0(%arg0: i32) -> (i32, i32, i32) {
    %c0_i32 = arith.constant 0 : i32
    %c0_i32_0 = arith.constant 0 : i32
    %c0_i32_1 = arith.constant 0 : i32
    return %arg0, %c0_i32, %c0_i32_0 : i32, i32, i32
  }
  func.func @transform_1(%arg0: i32) -> (i32, i32) {
    %c0_i32 = arith.constant 0 : i32
    %c0_i32_0 = arith.constant 0 : i32
    %c0_i32_1 = arith.constant 0 : i32
    return %c0_i32, %c0_i32_0 : i32, i32
  }
  func.func @transform_2(%arg0: i32) -> (i32, i32) {
    %c0_i32 = arith.constant 0 : i32
    %c0_i32_0 = arith.constant 0 : i32
    %c0_i32_1 = arith.constant 0 : i32
    return %c0_i32, %c0_i32_0 : i32, i32
  }
  func.func @transform_3(%arg0: i32) -> (i32, i32) {
    %c0_i32 = arith.constant 0 : i32
    %c0_i32_0 = arith.constant 0 : i32
    %c0_i32_1 = arith.constant 0 : i32
    return %c0_i32, %c0_i32_0 : i32, i32
  }
  func.func @transform_4(%arg0: i32) -> (i32, i32, i32) {
    %c0_i32 = arith.constant 0 : i32
    %c0_i32_0 = arith.constant 0 : i32
    %c0_i32_1 = arith.constant 0 : i32
    return %arg0, %c0_i32, %c0_i32_0 : i32, i32, i32
  }
  func.func @transform_5(%arg0: i32) -> (i32, i32, i32) {
    %c0_i32 = arith.constant 0 : i32
    %c0_i32_0 = arith.constant 0 : i32
    %c0_i32_1 = arith.constant 0 : i32
    return %arg0, %c0_i32, %c0_i32_0 : i32, i32, i32
  }
  func.func @transform_6(%arg0: i32) -> (i32, i32, i32) {
    %c0_i32 = arith.constant 0 : i32
    %c0_i32_0 = arith.constant 0 : i32
    %c0_i32_1 = arith.constant 0 : i32
    return %arg0, %c0_i32, %c0_i32_0 : i32, i32, i32
  }
}

module attributes {stable_mosaic.version = 11 : i64} {
  func.func @_affine_relu_kernel(%arg0: i32, %arg1: memref<1x104x128xf32, #tpu.memory_space<vmem>>, %arg2: memref<1x128xf32, #tpu.memory_space<vmem>>, %arg3: memref<1x128xf32, #tpu.memory_space<vmem>>, %arg4: memref<1x104x128xf32, #tpu.memory_space<vmem>>) attributes {dimension_semantics = [#tpu.dimension_semantics<parallel>], iteration_bounds = array<i64: 2>, scalar_prefetch = 0 : i64, scratch_operands = 0 : i64, tpu.core_type = #tpu.core_type<tc>, window_params = [{transform_indices = @transform_0, window_bounds = array<i64: 1, 104, 128>}, {pipeline_mode = #tpu.pipeline_mode<synchronous>, transform_indices = @transform_1, window_bounds = array<i64: 1, 128>}, {pipeline_mode = #tpu.pipeline_mode<synchronous>, transform_indices = @transform_2, window_bounds = array<i64: 1, 128>}, {transform_indices = @transform_3, window_bounds = array<i64: 1, 104, 128>}]} {
    %c0 = arith.constant 0 : index
    %c0_0 = arith.constant 0 : index
    %c0_1 = arith.constant 0 : index
    %0 = vector.load %arg1[%c0, %c0_0, %c0_1] : memref<1x104x128xf32, #tpu.memory_space<vmem>>, vector<1x104x128xf32>
    %c0_2 = arith.constant 0 : index
    %c0_3 = arith.constant 0 : index
    %1 = vector.load %arg2[%c0_2, %c0_3] : memref<1x128xf32, #tpu.memory_space<vmem>>, vector<1x128xf32>
    %2 = vector.shape_cast %1 : vector<1x128xf32> to vector<1x1x128xf32>
    %3 = vector.broadcast %2 : vector<1x1x128xf32> to vector<1x104x128xf32>
    %4 = arith.mulf %0, %3 : vector<1x104x128xf32>
    %c0_4 = arith.constant 0 : index
    %c0_5 = arith.constant 0 : index
    %5 = vector.load %arg3[%c0_4, %c0_5] : memref<1x128xf32, #tpu.memory_space<vmem>>, vector<1x128xf32>
    %6 = vector.shape_cast %5 : vector<1x128xf32> to vector<1x1x128xf32>
    %7 = vector.broadcast %6 : vector<1x1x128xf32> to vector<1x104x128xf32>
    %8 = arith.addf %4, %7 : vector<1x104x128xf32>
    %cst = arith.constant 0.000000e+00 : f32
    %9 = vector.broadcast %cst : f32 to vector<1x104x128xf32>
    %10 = arith.maximumf %8, %9 : vector<1x104x128xf32>
    %c0_6 = arith.constant 0 : index
    %c0_7 = arith.constant 0 : index
    %c0_8 = arith.constant 0 : index
    %11 = vector.load %arg4[%c0_6, %c0_7, %c0_8] : memref<1x104x128xf32, #tpu.memory_space<vmem>>, vector<1x104x128xf32>
    tpu.vector_store %arg4[%c0_6, %c0_7, %c0_8], %10 {strides = array<i32>} : memref<1x104x128xf32, #tpu.memory_space<vmem>>, vector<1x104x128xf32>,
    return
  }
  func.func @transform_0(%arg0: i32) -> (i32, i32, i32) {
    %c0_i32 = arith.constant 0 : i32
    %c0_i32_0 = arith.constant 0 : i32
    %c0_i32_1 = arith.constant 0 : i32
    return %arg0, %c0_i32, %c0_i32_0 : i32, i32, i32
  }
  func.func @transform_1(%arg0: i32) -> (i32, i32) {
    %c0_i32 = arith.constant 0 : i32
    %c0_i32_0 = arith.constant 0 : i32
    %c0_i32_1 = arith.constant 0 : i32
    return %c0_i32, %c0_i32_0 : i32, i32
  }
  func.func @transform_2(%arg0: i32) -> (i32, i32) {
    %c0_i32 = arith.constant 0 : i32
    %c0_i32_0 = arith.constant 0 : i32
    %c0_i32_1 = arith.constant 0 : i32
    return %c0_i32, %c0_i32_0 : i32, i32
  }
  func.func @transform_3(%arg0: i32) -> (i32, i32, i32) {
    %c0_i32 = arith.constant 0 : i32
    %c0_i32_0 = arith.constant 0 : i32
    %c0_i32_1 = arith.constant 0 : i32
    return %arg0, %c0_i32, %c0_i32_0 : i32, i32, i32
  }
}

module attributes {stable_mosaic.version = 11 : i64} {
  func.func @_conv3x3_kernel(%arg0: i32, %arg1: memref<1x104x128xf32, #tpu.memory_space<vmem>>, %arg2: memref<1152x128xbf16, #tpu.memory_space<vmem>>, %arg3: memref<1x128xf32, #tpu.memory_space<vmem>>, %arg4: memref<104x1xf32, #tpu.memory_space<vmem>>, %arg5: memref<1x128xf32, #tpu.memory_space<vmem>>, %arg6: memref<1x128xf32, #tpu.memory_space<vmem>>, %arg7: memref<1x104x128xf32, #tpu.memory_space<vmem>>, %arg8: memref<1x1x128xf32, #tpu.memory_space<vmem>>, %arg9: memref<1x1x128xf32, #tpu.memory_space<vmem>>, %arg10: memref<104x128xf32, #tpu.memory_space<vmem>>) attributes {dimension_semantics = [#tpu.dimension_semantics<parallel>], iteration_bounds = array<i64: 2>, scalar_prefetch = 0 : i64, scratch_operands = 1 : i64, tpu.core_type = #tpu.core_type<tc>, window_params = [{transform_indices = @transform_0, window_bounds = array<i64: 1, 104, 128>}, {pipeline_mode = #tpu.pipeline_mode<synchronous>, transform_indices = @transform_1, window_bounds = array<i64: 1152, 128>}, {pipeline_mode = #tpu.pipeline_mode<synchronous>, transform_indices = @transform_2, window_bounds = array<i64: 1, 128>}, {pipeline_mode = #tpu.pipeline_mode<synchronous>, transform_indices = @transform_3, window_bounds = array<i64: 104, 1>}, {pipeline_mode = #tpu.pipeline_mode<synchronous>, transform_indices = @transform_4, window_bounds = array<i64: 1, 128>}, {pipeline_mode = #tpu.pipeline_mode<synchronous>, transform_indices = @transform_5, window_bounds = array<i64: 1, 128>}, {transform_indices = @transform_6, window_bounds = array<i64: 1, 104, 128>}, {transform_indices = @transform_7, window_bounds = array<i64: 1, 1, 128>}, {transform_indices = @transform_8, window_bounds = array<i64: 1, 1, 128>}]} {
    %c0 = arith.constant 0 : index
    %c0_0 = arith.constant 0 : index
    %c0_1 = arith.constant 0 : index
    %0 = vector.load %arg1[%c0, %c0_0, %c0_1] : memref<1x104x128xf32, #tpu.memory_space<vmem>>, vector<1x104x128xf32>
    %1 = vector.shape_cast %0 : vector<1x104x128xf32> to vector<104x128xf32>
    %c0_2 = arith.constant 0 : index
    %c0_3 = arith.constant 0 : index
    %2 = vector.load %arg5[%c0_2, %c0_3] : memref<1x128xf32, #tpu.memory_space<vmem>>, vector<1x128xf32>
    %3 = vector.broadcast %2 : vector<1x128xf32> to vector<104x128xf32>
    %4 = arith.mulf %1, %3 : vector<104x128xf32>
    %c0_4 = arith.constant 0 : index
    %c0_5 = arith.constant 0 : index
    %5 = vector.load %arg6[%c0_4, %c0_5] : memref<1x128xf32, #tpu.memory_space<vmem>>, vector<1x128xf32>
    %6 = vector.broadcast %5 : vector<1x128xf32> to vector<104x128xf32>
    %7 = arith.addf %4, %6 : vector<104x128xf32>
    %cst = arith.constant 0.000000e+00 : f32
    %8 = vector.broadcast %cst : f32 to vector<104x128xf32>
    %9 = arith.maximumf %7, %8 : vector<104x128xf32>
    %c0_6 = arith.constant 0 : index
    %c0_7 = arith.constant 0 : index
    %10 = vector.load %arg4[%c0_6, %c0_7] : memref<104x1xf32, #tpu.memory_space<vmem>>, vector<104x1xf32>
    %11 = vector.broadcast %10 : vector<104x1xf32> to vector<104x128xf32>
    %12 = arith.mulf %9, %11 : vector<104x128xf32>
    %c0_8 = arith.constant 0 : index
    %c0_9 = arith.constant 0 : index
    %13 = vector.load %arg10[%c0_8, %c0_9] : memref<104x128xf32, #tpu.memory_space<vmem>>, vector<104x128xf32>
    tpu.vector_store %arg10[%c0_8, %c0_9], %12 {strides = array<i32>} : memref<104x128xf32, #tpu.memory_space<vmem>>, vector<104x128xf32>,
    %cst_10 = arith.constant 0.000000e+00 : f32
    %14 = vector.broadcast %cst_10 : f32 to vector<80x128xf32>
    %c0_11 = arith.constant 0 : index
    %c0_12 = arith.constant 0 : index
    %15 = vector.load %arg10[%c0_11, %c0_12] : memref<104x128xf32, #tpu.memory_space<vmem>>, vector<80x128xf32>
    %16 = arith.truncf %15 : vector<80x128xf32> to vector<80x128xbf16>
    %c0_13 = arith.constant 0 : index
    %c0_14 = arith.constant 0 : index
    %17 = vector.load %arg2[%c0_13, %c0_14] : memref<1152x128xbf16, #tpu.memory_space<vmem>>, vector<128x128xbf16>
    %cst_15 = arith.constant dense<0.000000e+00> : vector<80x128xf32>
    %18 = tpu.matmul %16, %17, %cst_15 {dimension_numbers = #tpu.dot_dimension_numbers<[1], [0], [0], [1], [0, 0, 1, 1], [], []>} : vector<80x128xbf16>, vector<128x128xbf16>, vector<80x128xf32> -> vector<80x128xf32>
    %19 = arith.addf %14, %18 : vector<80x128xf32>
    %c1 = arith.constant 1 : index
    %c0_16 = arith.constant 0 : index
    %20 = vector.load %arg10[%c1, %c0_16] : memref<104x128xf32, #tpu.memory_space<vmem>>, vector<80x128xf32>
    %21 = arith.truncf %20 : vector<80x128xf32> to vector<80x128xbf16>
    %c128 = arith.constant 128 : index
    %c0_17 = arith.constant 0 : index
    %22 = vector.load %arg2[%c128, %c0_17] : memref<1152x128xbf16, #tpu.memory_space<vmem>>, vector<128x128xbf16>
    %cst_18 = arith.constant dense<0.000000e+00> : vector<80x128xf32>
    %23 = tpu.matmul %21, %22, %cst_18 {dimension_numbers = #tpu.dot_dimension_numbers<[1], [0], [0], [1], [0, 0, 1, 1], [], []>} : vector<80x128xbf16>, vector<128x128xbf16>, vector<80x128xf32> -> vector<80x128xf32>
    %24 = arith.addf %19, %23 : vector<80x128xf32>
    %c2 = arith.constant 2 : index
    %c0_19 = arith.constant 0 : index
    %25 = vector.load %arg10[%c2, %c0_19] : memref<104x128xf32, #tpu.memory_space<vmem>>, vector<80x128xf32>
    %26 = arith.truncf %25 : vector<80x128xf32> to vector<80x128xbf16>
    %c256 = arith.constant 256 : index
    %c0_20 = arith.constant 0 : index
    %27 = vector.load %arg2[%c256, %c0_20] : memref<1152x128xbf16, #tpu.memory_space<vmem>>, vector<128x128xbf16>
    %cst_21 = arith.constant dense<0.000000e+00> : vector<80x128xf32>
    %28 = tpu.matmul %26, %27, %cst_21 {dimension_numbers = #tpu.dot_dimension_numbers<[1], [0], [0], [1], [0, 0, 1, 1], [], []>} : vector<80x128xbf16>, vector<128x128xbf16>, vector<80x128xf32> -> vector<80x128xf32>
    %29 = arith.addf %24, %28 : vector<80x128xf32>
    %c10 = arith.constant 10 : index
    %c0_22 = arith.constant 0 : index
    %30 = vector.load %arg10[%c10, %c0_22] : memref<104x128xf32, #tpu.memory_space<vmem>>, vector<80x128xf32>
    %31 = arith.truncf %30 : vector<80x128xf32> to vector<80x128xbf16>
    %c384 = arith.constant 384 : index
    %c0_23 = arith.constant 0 : index
    %32 = vector.load %arg2[%c384, %c0_23] : memref<1152x128xbf16, #tpu.memory_space<vmem>>, vector<128x128xbf16>
    %cst_24 = arith.constant dense<0.000000e+00> : vector<80x128xf32>
    %33 = tpu.matmul %31, %32, %cst_24 {dimension_numbers = #tpu.dot_dimension_numbers<[1], [0], [0], [1], [0, 0, 1, 1], [], []>} : vector<80x128xbf16>, vector<128x128xbf16>, vector<80x128xf32> -> vector<80x128xf32>
    %34 = arith.addf %29, %33 : vector<80x128xf32>
    %c11 = arith.constant 11 : index
    %c0_25 = arith.constant 0 : index
    %35 = vector.load %arg10[%c11, %c0_25] : memref<104x128xf32, #tpu.memory_space<vmem>>, vector<80x128xf32>
    %36 = arith.truncf %35 : vector<80x128xf32> to vector<80x128xbf16>
    %c512 = arith.constant 512 : index
    %c0_26 = arith.constant 0 : index
    %37 = vector.load %arg2[%c512, %c0_26] : memref<1152x128xbf16, #tpu.memory_space<vmem>>, vector<128x128xbf16>
    %cst_27 = arith.constant dense<0.000000e+00> : vector<80x128xf32>
    %38 = tpu.matmul %36, %37, %cst_27 {dimension_numbers = #tpu.dot_dimension_numbers<[1], [0], [0], [1], [0, 0, 1, 1], [], []>} : vector<80x128xbf16>, vector<128x128xbf16>, vector<80x128xf32> -> vector<80x128xf32>
    %39 = arith.addf %34, %38 : vector<80x128xf32>
    %c12 = arith.constant 12 : index
    %c0_28 = arith.constant 0 : index
    %40 = vector.load %arg10[%c12, %c0_28] : memref<104x128xf32, #tpu.memory_space<vmem>>, vector<80x128xf32>
    %41 = arith.truncf %40 : vector<80x128xf32> to vector<80x128xbf16>
    %c640 = arith.constant 640 : index
    %c0_29 = arith.constant 0 : index
    %42 = vector.load %arg2[%c640, %c0_29] : memref<1152x128xbf16, #tpu.memory_space<vmem>>, vector<128x128xbf16>
    %cst_30 = arith.constant dense<0.000000e+00> : vector<80x128xf32>
    %43 = tpu.matmul %41, %42, %cst_30 {dimension_numbers = #tpu.dot_dimension_numbers<[1], [0], [0], [1], [0, 0, 1, 1], [], []>} : vector<80x128xbf16>, vector<128x128xbf16>, vector<80x128xf32> -> vector<80x128xf32>
    %44 = arith.addf %39, %43 : vector<80x128xf32>
    %c20 = arith.constant 20 : index
    %c0_31 = arith.constant 0 : index
    %45 = vector.load %arg10[%c20, %c0_31] : memref<104x128xf32, #tpu.memory_space<vmem>>, vector<80x128xf32>
    %46 = arith.truncf %45 : vector<80x128xf32> to vector<80x128xbf16>
    %c768 = arith.constant 768 : index
    %c0_32 = arith.constant 0 : index
    %47 = vector.load %arg2[%c768, %c0_32] : memref<1152x128xbf16, #tpu.memory_space<vmem>>, vector<128x128xbf16>
    %cst_33 = arith.constant dense<0.000000e+00> : vector<80x128xf32>
    %48 = tpu.matmul %46, %47, %cst_33 {dimension_numbers = #tpu.dot_dimension_numbers<[1], [0], [0], [1], [0, 0, 1, 1], [], []>} : vector<80x128xbf16>, vector<128x128xbf16>, vector<80x128xf32> -> vector<80x128xf32>
    %49 = arith.addf %44, %48 : vector<80x128xf32>
    %c21 = arith.constant 21 : index
    %c0_34 = arith.constant 0 : index
    %50 = vector.load %arg10[%c21, %c0_34] : memref<104x128xf32, #tpu.memory_space<vmem>>, vector<80x128xf32>
    %51 = arith.truncf %50 : vector<80x128xf32> to vector<80x128xbf16>
    %c896 = arith.constant 896 : index
    %c0_35 = arith.constant 0 : index
    %52 = vector.load %arg2[%c896, %c0_35] : memref<1152x128xbf16, #tpu.memory_space<vmem>>, vector<128x128xbf16>
    %cst_36 = arith.constant dense<0.000000e+00> : vector<80x128xf32>
    %53 = tpu.matmul %51, %52, %cst_36 {dimension_numbers = #tpu.dot_dimension_numbers<[1], [0], [0], [1], [0, 0, 1, 1], [], []>} : vector<80x128xbf16>, vector<128x128xbf16>, vector<80x128xf32> -> vector<80x128xf32>
    %54 = arith.addf %49, %53 : vector<80x128xf32>
    %c22 = arith.constant 22 : index
    %c0_37 = arith.constant 0 : index
    %55 = vector.load %arg10[%c22, %c0_37] : memref<104x128xf32, #tpu.memory_space<vmem>>, vector<80x128xf32>
    %56 = arith.truncf %55 : vector<80x128xf32> to vector<80x128xbf16>
    %c1024 = arith.constant 1024 : index
    %c0_38 = arith.constant 0 : index
    %57 = vector.load %arg2[%c1024, %c0_38] : memref<1152x128xbf16, #tpu.memory_space<vmem>>, vector<128x128xbf16>
    %cst_39 = arith.constant dense<0.000000e+00> : vector<80x128xf32>
    %58 = tpu.matmul %56, %57, %cst_39 {dimension_numbers = #tpu.dot_dimension_numbers<[1], [0], [0], [1], [0, 0, 1, 1], [], []>} : vector<80x128xbf16>, vector<128x128xbf16>, vector<80x128xf32> -> vector<80x128xf32>
    %59 = arith.addf %54, %58 : vector<80x128xf32>
    %c0_40 = arith.constant 0 : index
    %c0_41 = arith.constant 0 : index
    %60 = vector.load %arg3[%c0_40, %c0_41] : memref<1x128xf32, #tpu.memory_space<vmem>>, vector<1x128xf32>
    %61 = vector.broadcast %60 : vector<1x128xf32> to vector<80x128xf32>
    %62 = arith.addf %59, %61 : vector<80x128xf32>
    %c11_42 = arith.constant 11 : index
    %c0_43 = arith.constant 0 : index
    %63 = vector.load %arg4[%c11_42, %c0_43] : memref<104x1xf32, #tpu.memory_space<vmem>>, vector<80x1xf32>
    %64 = vector.broadcast %63 : vector<80x1xf32> to vector<80x128xf32>
    %65 = arith.mulf %62, %64 : vector<80x128xf32>
    %cst_44 = arith.constant dense<0.000000e+00> : vector<128xf32>
    %66 = vector.multi_reduction <add>, %65, %cst_44 [0] : vector<80x128xf32> to vector<128xf32>
    %67 = vector.shape_cast %66 : vector<128xf32> to vector<1x128xf32>
    %c0_45 = arith.constant 0 : index
    %c0_46 = arith.constant 0 : index
    %c0_47 = arith.constant 0 : index
    %68 = vector.load %arg8[%c0_45, %c0_46, %c0_47] : memref<1x1x128xf32, #tpu.memory_space<vmem>>, vector<1x1x128xf32>
    %69 = vector.shape_cast %68 : vector<1x1x128xf32> to vector<1x128xf32>
    %70 = vector.shape_cast %67 : vector<1x128xf32> to vector<1x1x128xf32>
    tpu.vector_store %arg8[%c0_45, %c0_46, %c0_47], %70 {strides = array<i32>} : memref<1x1x128xf32, #tpu.memory_space<vmem>>, vector<1x1x128xf32>,
    %71 = arith.mulf %65, %65 : vector<80x128xf32>
    %cst_48 = arith.constant dense<0.000000e+00> : vector<128xf32>
    %72 = vector.multi_reduction <add>, %71, %cst_48 [0] : vector<80x128xf32> to vector<128xf32>
    %73 = vector.shape_cast %72 : vector<128xf32> to vector<1x128xf32>
    %c0_49 = arith.constant 0 : index
    %c0_50 = arith.constant 0 : index
    %c0_51 = arith.constant 0 : index
    %74 = vector.load %arg9[%c0_49, %c0_50, %c0_51] : memref<1x1x128xf32, #tpu.memory_space<vmem>>, vector<1x1x128xf32>
    %75 = vector.shape_cast %74 : vector<1x1x128xf32> to vector<1x128xf32>
    %76 = vector.shape_cast %73 : vector<1x128xf32> to vector<1x1x128xf32>
    tpu.vector_store %arg9[%c0_49, %c0_50, %c0_51], %76 {strides = array<i32>} : memref<1x1x128xf32, #tpu.memory_space<vmem>>, vector<1x1x128xf32>,
    %cst_52 = arith.constant 0.000000e+00 : f32
    %77 = vector.broadcast %cst_52 : f32 to vector<1x104x128xf32>
    %c0_53 = arith.constant 0 : index
    %c0_54 = arith.constant 0 : index
    %c0_55 = arith.constant 0 : index
    %78 = vector.load %arg7[%c0_53, %c0_54, %c0_55] : memref<1x104x128xf32, #tpu.memory_space<vmem>>, vector<1x104x128xf32>
    tpu.vector_store %arg7[%c0_53, %c0_54, %c0_55], %77 {strides = array<i32>} : memref<1x104x128xf32, #tpu.memory_space<vmem>>, vector<1x104x128xf32>,
    %c0_56 = arith.constant 0 : index
    %c11_57 = arith.constant 11 : index
    %c0_58 = arith.constant 0 : index
    %79 = vector.load %arg7[%c0_56, %c11_57, %c0_58] : memref<1x104x128xf32, #tpu.memory_space<vmem>>, vector<1x80x128xf32>
    %80 = vector.shape_cast %79 : vector<1x80x128xf32> to vector<80x128xf32>
    %81 = vector.shape_cast %65 : vector<80x128xf32> to vector<1x80x128xf32>
    tpu.vector_store %arg7[%c0_56, %c11_57, %c0_58], %81 {strides = array<i32>} : memref<1x104x128xf32, #tpu.memory_space<vmem>>, vector<1x80x128xf32>,
    return
  }
  func.func @transform_0(%arg0: i32) -> (i32, i32, i32) {
    %c0_i32 = arith.constant 0 : i32
    %c0_i32_0 = arith.constant 0 : i32
    %c0_i32_1 = arith.constant 0 : i32
    return %arg0, %c0_i32, %c0_i32_0 : i32, i32, i32
  }
  func.func @transform_1(%arg0: i32) -> (i32, i32) {
    %c0_i32 = arith.constant 0 : i32
    %c0_i32_0 = arith.constant 0 : i32
    %c0_i32_1 = arith.constant 0 : i32
    return %c0_i32, %c0_i32_0 : i32, i32
  }
  func.func @transform_2(%arg0: i32) -> (i32, i32) {
    %c0_i32 = arith.constant 0 : i32
    %c0_i32_0 = arith.constant 0 : i32
    %c0_i32_1 = arith.constant 0 : i32
    return %c0_i32, %c0_i32_0 : i32, i32
  }
  func.func @transform_3(%arg0: i32) -> (i32, i32) {
    %c0_i32 = arith.constant 0 : i32
    %c0_i32_0 = arith.constant 0 : i32
    %c0_i32_1 = arith.constant 0 : i32
    return %c0_i32, %c0_i32_0 : i32, i32
  }
  func.func @transform_4(%arg0: i32) -> (i32, i32) {
    %c0_i32 = arith.constant 0 : i32
    %c0_i32_0 = arith.constant 0 : i32
    %c0_i32_1 = arith.constant 0 : i32
    return %c0_i32, %c0_i32_0 : i32, i32
  }
  func.func @transform_5(%arg0: i32) -> (i32, i32) {
    %c0_i32 = arith.constant 0 : i32
    %c0_i32_0 = arith.constant 0 : i32
    %c0_i32_1 = arith.constant 0 : i32
    return %c0_i32, %c0_i32_0 : i32, i32
  }
  func.func @transform_6(%arg0: i32) -> (i32, i32, i32) {
    %c0_i32 = arith.constant 0 : i32
    %c0_i32_0 = arith.constant 0 : i32
    %c0_i32_1 = arith.constant 0 : i32
    return %arg0, %c0_i32, %c0_i32_0 : i32, i32, i32
  }
  func.func @transform_7(%arg0: i32) -> (i32, i32, i32) {
    %c0_i32 = arith.constant 0 : i32
    %c0_i32_0 = arith.constant 0 : i32
    %c0_i32_1 = arith.constant 0 : i32
    return %arg0, %c0_i32, %c0_i32_0 : i32, i32, i32
  }
  func.func @transform_8(%arg0: i32) -> (i32, i32, i32) {
    %c0_i32 = arith.constant 0 : i32
    %c0_i32_0 = arith.constant 0 : i32
    %c0_i32_1 = arith.constant 0 : i32
    return %arg0, %c0_i32, %c0_i32_0 : i32, i32, i32
  }
}

</mosaic_0001>

<bundles_post_ra>
// kernel: encoder_block_forward.5
= control target key start
LH: loop header
LB: loop body
LE: loop exit
PB: predicated region body
PF: predicated region fallthrough
CT: control target
= control target key end

     0   :  { %s347_s12 = smov 0   ;;  %s400_s0 = inlined_call_operand.vmem [shape: f32[2,104,128], index: 0, kind: input, shape index: {}]   ;;  %s401_s1 = inlined_call_operand.vmem [shape: f32[1,128], index: 1, kind: input, shape index: {}]   ;;  %s402_s2 = inlined_call_operand.vmem [shape: f32[1,128], index: 2, kind: input, shape index: {}]   ;;  %s403_s3 = inlined_call_operand.vmem [shape: f32[2,104,128], index: 3, kind: output, shape index: {}]  }
   0x1 LB: > { %s299_s13 = sadd.s32 4294967295, %s325_s12   ;;  %p303_p0 = scmp.ge.s32.totalorder %s325_s12, 1  ;;  %s325_s12 = sphi %s347_s12, %s13_s12  }
   0x2   : > { %p137_p1 = scmp.lt.s32.totalorder %s325_s12, 3 }
   0x4   : > { %p138_p2 = pnand %p303_p0, %p137_p1 }
   0x5   : > { %p161_p3 = scmp.lt.s32.totalorder (!%p138_p2), %s299_s13, 1 }
   0x6   : > { %141 = sbr.rel (%p138_p2) target bundleno = 35 (0x23), region = 32 }
   0xb   : > { %s405_s13 = smov (!%p161_p3, %s299_s13), 1  ;;  %v317_v0 = vld [vmem:[%s401_s1] ss:$0 sm:$0xff] }
   0xc   : > { %s308_s14 = smul.u32 104, %s405_s13  ;;  %v318_v1 = vld [vmem:[%s402_s2] ss:$0 sm:$0xff] }
   0xe   : > { %s361_s19 = scalar_lea.vmem %s400_s0, %s308_s14  ;;  %s377_s24 = scalar_lea.vmem %s403_s3, %s308_s14 }
   0xf   : > { %v171_v2 = vld [vmem:[%s361_s19] sm:$0xff]  ;;  %v172_v3 = vld [vmem:[%s361_s19 + $0x8] sm:$0xff]  ;;  %v173_v4 = vld [vmem:[%s361_s19 + $0x10] sm:$0xff] }
  0x10   : > { %v188_v5 = vmul.f32 %v317_v0, %v171_v2  ;;  %v189_v6 = vmul.f32 %v317_v0, %v172_v3  ;;  %v190_v7 = vmul.f32 %v317_v0, %v173_v4  ;;  %v174_v8 = vld [vmem:[%s361_s19 + $0x18] sm:$0xff]  ;;  %v175_v9 = vld [vmem:[%s361_s19 + $0x20] sm:$0xff]  ;;  %v176_v10 = vld [vmem:[%s361_s19 + $0x28] sm:$0xff] }
  0x11   : > { %v191_v11 = vmul.f32 %v317_v0, %v174_v8  ;;  %v192_v12 = vmul.f32 %v317_v0, %v175_v9  ;;  %v193_v13 = vmul.f32 %v317_v0, %v176_v10  ;;  %v177_v14 = vld [vmem:[%s361_s19 + $0x30] sm:$0xff]  ;;  %v178_v15 = vld [vmem:[%s361_s19 + $0x38] sm:$0xff]  ;;  %v179_v24 = vld [vmem:[%s361_s19 + $0x40] sm:$0xff] }
  0x12   : > { %v205_v16 = vadd.f32 %v318_v1, %v188_v5  ;;  %v206_v17 = vadd.f32 %v318_v1, %v189_v6  ;;  %v207_v18 = vadd.f32 %v318_v1, %v190_v7  ;;  %v194_v19 = vmul.f32 %v317_v0, %v177_v14  ;;  %v180_v25 = vld [vmem:[%s361_s19 + $0x48] sm:$0xff]  ;;  %v181_v26 = vld [vmem:[%s361_s19 + $0x50] sm:$0xff]  ;;  %v182_v31 = vld [vmem:[%s361_s19 + $0x58] sm:$0xff] }
  0x13   : > { %v208_v20 = vadd.f32 %v318_v1, %v191_v11  ;;  %v209_v21 = vadd.f32 %v318_v1, %v192_v12  ;;  %v210_v22 = vadd.f32 %v318_v1, %v193_v13  ;;  %v195_v23 = vmul.f32 %v317_v0, %v178_v15  ;;  %v183_v32 = vld [vmem:[%s361_s19 + $0x60] sm:$0xff] }
  0x14   : > { %v218_v27 = vmax.f32 %v205_v16, 0.0  ;;  %v219_v28 = vmax.f32 %v206_v17, 0.0  ;;  %v220_v29 = vmax.f32 %v207_v18, 0.0  ;;  %v211_v30 = vadd.f32 %v318_v1, %v194_v19 }
  0x15   : > { %v221_v33 = vmax.f32 %v208_v20, 0.0  ;;  %v212_v34 = vadd.f32 %v318_v1, %v195_v23  ;;  %v222_v35 = vmax.f32 %v209_v21, 0.0  ;;  %v196_v36 = vmul.f32 %v317_v0, %v179_v24 }
  0x16   : > { %231 = vst [vmem:[%s377_s24] sm:$0xff] %v218_v27  ;;  %v197_v37 = vmul.f32 %v317_v0, %v180_v25  ;;  %v198_v38 = vmul.f32 %v317_v0, %v181_v26  ;;  %v223_v39 = vmax.f32 %v210_v22, 0.0  ;;  %v199_v40 = vmul.f32 %v317_v0, %v182_v31 }
  0x17   : > { %232 = vst [vmem:[%s377_s24 + $0x8] sm:$0xff] %v219_v28  ;;  %v200_v41 = vmul.f32 %v317_v0, %v183_v32  ;;  %v224_v42 = vmax.f32 %v211_v30, 0.0  ;;  %v213_v43 = vadd.f32 %v318_v1, %v196_v36  ;;  %v225_v46 = vmax.f32 %v212_v34, 0.0 }
  0x18   : > { %233 = vst [vmem:[%s377_s24 + $0x10] sm:$0xff] %v220_v29  ;;  %v214_v44 = vadd.f32 %v318_v1, %v197_v37  ;;  %v215_v45 = vadd.f32 %v318_v1, %v198_v38  ;;  %v216_v47 = vadd.f32 %v318_v1, %v199_v40 }
  0x19   : > { %234 = vst [vmem:[%s377_s24 + $0x18] sm:$0xff] %v221_v33  ;;  %v226_v48 = vmax.f32 %v213_v43, 0.0  ;;  %v217_v49 = vadd.f32 %v318_v1, %v200_v41 }
  0x1a   : > { %235 = vst [vmem:[%s377_s24 + $0x20] sm:$0xff] %v222_v35  ;;  %v227_v50 = vmax.f32 %v214_v44, 0.0  ;;  %v228_v51 = vmax.f32 %v215_v45, 0.0  ;;  %v229_v52 = vmax.f32 %v216_v47, 0.0 }
  0x1b   : > { %236 = vst [vmem:[%s377_s24 + $0x28] sm:$0xff] %v223_v39  ;;  %v230_v53 = vmax.f32 %v217_v49, 0.0 }
  0x1c   : > { %237 = vst [vmem:[%s377_s24 + $0x30] sm:$0xff] %v224_v42 }
  0x1d   : > { %238 = vst [vmem:[%s377_s24 + $0x38] sm:$0xff] %v225_v46 }
  0x1e   : > { %239 = vst [vmem:[%s377_s24 + $0x40] sm:$0xff] %v226_v48 }
  0x1f   : > { %240 = vst [vmem:[%s377_s24 + $0x48] sm:$0xff] %v227_v50 }
  0x20   : > { %241 = vst [vmem:[%s377_s24 + $0x50] sm:$0xff] %v228_v51 }
  0x21   : > { %242 = vst [vmem:[%s377_s24 + $0x58] sm:$0xff] %v229_v52 }
  0x22   : > { %243 = vst [vmem:[%s377_s24 + $0x60] sm:$0xff] %v230_v53 }
  0x23 PF: > { %s13_s12 = sadd.s32 1, %s325_s12  }
  0x24   : > { %p10_p4 = scmp.ge.s32.totalorder %s13_s12, 4  }
  0x26   :  { %12 = sbr.rel (!%p10_p4) target bundleno = 1 (0x1), region = 62 }

// kernel: encoder_block_forward.3
= control target key start
LH: loop header
LB: loop body
LE: loop exit
PB: predicated region body
PF: predicated region fallthrough
CT: control target
= control target key end

     0   :  { %s2081_s21 = smov 0   ;;  %s2530_s0 = inlined_call_operand.vmem [shape: f32[2,104,128], index: 0, kind: input, shape index: {}]   ;;  %s2531_s1 = inlined_call_operand.vmem [shape: bf16[1152,128], index: 1, kind: input, shape index: {}]   ;;  %s2532_s2 = inlined_call_operand.vmem [shape: f32[1,128], index: 2, kind: input, shape index: {}]   ;;  %s2533_s3 = inlined_call_operand.vmem [shape: f32[104,1], index: 3, kind: input, shape index: {}]   ;;  %s2534_s4 = inlined_call_operand.vmem [shape: f32[2,104,128], index: 4, kind: output, shape index: {0}]   ;;  %s2535_s5 = inlined_call_operand.vmem [shape: f32[2,1,128], index: 5, kind: output, shape index: {1}]   ;;  %s2536_s6 = inlined_call_operand.vmem [shape: f32[2,1,128], index: 6, kind: output, shape index: {2}]  }
   0x1 LB: > { %s1636_s22 = sadd.s32 4294967295, %s2042_s21   ;;  %p1640_p0 = scmp.ge.s32.totalorder %s2042_s21, 1  ;;  %s2042_s21 = sphi %s2081_s21, %s17_s21  }
   0x2   : > { %p217_p1 = scmp.lt.s32.totalorder %s2042_s21, 3 }
   0x4   : > { %p218_p2 = pnand %p1640_p0, %p217_p1 }
   0x5   : > { %p253_p3 = scmp.lt.s32.totalorder (!%p218_p2), %s1636_s22, 1 }
   0x6   : > { %221 = sbr.rel (%p218_p2) target bundleno = 389 (0x185), region = 36 }
   0xb   : > { %v1948_v0 = vld [vmem:[%s2531_s1 + $0x78] sm:$0xff]  ;;  %v1947_v1 = vld [vmem:[%s2531_s1 + $0x70] sm:$0xff]  ;;  %s2538_s22 = smov (!%p253_p3, %s1636_s22), 1  ;;  %v1946_v4 = vld [vmem:[%s2531_s1 + $0x68] sm:$0xff] }
   0xc   : > { %405 = vmatpush.bf16.msra.mxu0 %v1948_v0  ;;  %2005 = vmatpush.bf16.msra.mxu1 %v1948_v0  ;;  %v1964_v2 = vld [vmem:[%s2531_s1 + $0xf8] sm:$0xff]  ;;  %v1963_v3 = vld [vmem:[%s2531_s1 + $0xf0] sm:$0xff]  ;;  %s2021_s7 = smul.u32 104, %s2538_s22  ;;  %v1962_v9 = vld [vmem:[%s2531_s1 + $0xe8] sm:$0xff]  ;;  %s265_s11 = scalar_lea.vmem %s2535_s5, %s2538_s22 }
   0xd   : > { %2006 = vmatpush.bf16.msra.mxu2 %v1948_v0  ;;  %723 = vmatpush.bf16.msra.mxu3 %v1964_v2  ;;  %v1945_v11 = vld [vmem:[%s2531_s1 + $0x60] sm:$0xff]  ;;  %v1944_v17 = vld [vmem:[%s2531_s1 + $0x58] sm:$0xff]  ;;  %v1943_v21 = vld [vmem:[%s2531_s1 + $0x50] sm:$0xff] }
   0xe   : > { %s2112_s12 = scalar_lea.vmem %s2530_s0, %s2021_s7  ;;  %v1961_v14 = vld [vmem:[%s2531_s1 + $0xe0] sm:$0xff]  ;;  %v1960_v20 = vld [vmem:[%s2531_s1 + $0xd8] sm:$0xff]  ;;  %v1959_v22 = vld [vmem:[%s2531_s1 + $0xd0] sm:$0xff]  ;;  %s2458_s30 = scalar_lea.vmem %s2534_s4, %s2021_s7 }
   0xf   : > { %v2115_v5 = vld [vmem:[%s2112_s12] sm:$0xff]  ;;  %v2118_v6 = vld [vmem:[%s2112_s12 + $0x8] sm:$0xff]  ;;  %v2121_v7 = vld [vmem:[%s2112_s12 + $0x10] sm:$0xff] }
  0x10   : > { %406 = vmatpush.bf16.msra.mxu0 %v1947_v1  ;;  %2007 = vmatpush.bf16.msra.mxu1 %v1947_v1  ;;  %282 = vst [vmem:[#allocation2] sm:$0xff] %v2115_v5  ;;  %v2125_v8 = vld [vmem:[%s2112_s12 + $0x20] sm:$0xff]  ;;  %v2132_v10 = vld [vmem:[%s2112_s12 + $0x28] sm:$0xff]  ;;  %v2139_v12 = vld [vmem:[%s2112_s12 + $0x30] sm:$0xff] }
  0x11   : > { %2008 = vmatpush.bf16.msra.mxu2 %v1947_v1  ;;  %724 = vmatpush.bf16.msra.mxu3 %v1963_v3  ;;  %283 = vst [vmem:[#allocation2 + $0x8] sm:$0xff] %v2118_v6  ;;  %v2143_v13 = vld [vmem:[%s2112_s12 + $0x40] sm:$0xff]  ;;  %v2150_v15 = vld [vmem:[%s2112_s12 + $0x48] sm:$0xff]  ;;  %v279_v16 = vld [vmem:[%s2112_s12 + $0x50] sm:$0xff] }
  0x12   : > { %284 = vst [vmem:[#allocation2 + $0x10] sm:$0xff] %v2121_v7  ;;  %v2159_v18 = vld [vmem:[%s2112_s12 + $0x18] sm:$0xff]  ;;  %v1942_v23 = vld [vmem:[%s2531_s1 + $0x48] sm:$0xff]  ;;  %v1941_v25 = vld [vmem:[%s2531_s1 + $0x40] sm:$0xff] }
  0x13   : > { %286 = vst [vmem:[#allocation2 + $0x20] sm:$0xff] %v2125_v8  ;;  %v2163_v19 = vld [vmem:[%s2112_s12 + $0x38] sm:$0xff]  ;;  %v1958_v24 = vld [vmem:[%s2531_s1 + $0xc8] sm:$0xff]  ;;  %v1957_v38 = vld [vmem:[%s2531_s1 + $0xc0] sm:$0xff] }
  0x14   : > { %407 = vmatpush.bf16.msra.mxu0 %v1946_v4  ;;  %2009 = vmatpush.bf16.msra.mxu1 %v1946_v4  ;;  %287 = vst [vmem:[#allocation2 + $0x28] sm:$0xff] %v2132_v10  ;;  %v1940_v30 = vld [vmem:[%s2531_s1 + $0x38] sm:$0xff]  ;;  %v1939_v41 = vld [vmem:[%s2531_s1 + $0x30] sm:$0xff]  ;;  %v1938_v46 = vld [vmem:[%s2531_s1 + $0x28] sm:$0xff] }
  0x15   : > { %2010 = vmatpush.bf16.msra.mxu2 %v1946_v4  ;;  %725 = vmatpush.bf16.msra.mxu3 %v1962_v9  ;;  %288 = vst [vmem:[#allocation2 + $0x30] sm:$0xff] %v2139_v12  ;;  %v1956_v33 = vld [vmem:[%s2531_s1 + $0xb8] sm:$0xff]  ;;  %v1955_v43 = vld [vmem:[%s2531_s1 + $0xb0] sm:$0xff]  ;;  %v1954_v48 = vld [vmem:[%s2531_s1 + $0xa8] sm:$0xff] }
  0x16   : > { %290 = vst [vmem:[#allocation2 + $0x40] sm:$0xff] %v2143_v13  ;;  %v1972_v34 = vld [vmem:[%s2531_s1 + $0x138] sm:$0xff]  ;;  %v1971_v44 = vld [vmem:[%s2531_s1 + $0x130] sm:$0xff]  ;;  %v1970_v49 = vld [vmem:[%s2531_s1 + $0x128] sm:$0xff] }
  0x17   : > { %291 = vst [vmem:[#allocation2 + $0x48] sm:$0xff] %v2150_v15  ;;  %v1996_v42 = vld [vmem:[%s2531_s1 + $0x1f8] sm:$0xff]  ;;  %v1995_v47 = vld [vmem:[%s2531_s1 + $0x1f0] sm:$0xff]  ;;  %v1937_v50 = vld [vmem:[%s2531_s1 + $0x20] sm:$0xff] }
  0x18   : > { %408 = vmatpush.bf16.msra.mxu0 %v1945_v11  ;;  %2011 = vmatpush.bf16.msra.mxu1 %v1945_v11  ;;  %292 = vst [vmem:[#allocation2 + $0x50] sm:$0xff] %v279_v16  ;;  %v326_v26 = vld [vmem:[#allocation2 + $0x1] sm:$0xff]  ;;  %v1936_v57 = vld [vmem:[%s2531_s1 + $0x18] sm:$0xff]  ;;  %v1935_v0 = vld [vmem:[%s2531_s1 + $0x10] sm:$0xff] }
  0x19   : > { %2012 = vmatpush.bf16.msra.mxu2 %v1945_v11  ;;  %726 = vmatpush.bf16.msra.mxu3 %v1961_v14  ;;  %285 = vst [vmem:[#allocation2 + $0x18] sm:$0xff] %v2159_v18  ;;  %v327_v27 = vld [vmem:[#allocation2 + $0x9] sm:$0xff]  ;;  %v1953_v51 = vld [vmem:[%s2531_s1 + $0xa0] sm:$0xff]  ;;  %v1952_v58 = vld [vmem:[%s2531_s1 + $0x98] sm:$0xff] }
  0x1a   : > { %289 = vst [vmem:[#allocation2 + $0x38] sm:$0xff] %v2163_v19  ;;  %v336_v35 = vpack.c.bf16 %v327_v27, %v326_v26  ;;  %v2197_v39 = vld [vmem:[#allocation2 + $0xa] sm:$0xff]  ;;  %v1969_v52 = vld [vmem:[%s2531_s1 + $0x120] sm:$0xff]  ;;  %v1968_v59 = vld [vmem:[%s2531_s1 + $0x118] sm:$0xff] }
  0x1b   : > { %v330_v28 = vld [vmem:[#allocation2 + $0x21] sm:$0xff]  ;;  %v1951_v1 = vld [vmem:[%s2531_s1 + $0x90] sm:$0xff]  ;;  %v2004_v26 = vld [vmem:[%s2531_s1 + $0x238] sm:$0xff] }
  0x1c   : > { %409 = vmatpush.bf16.msra.mxu0 %v1944_v17  ;;  %2013 = vmatpush.bf16.msra.mxu1 %v1944_v17  ;;  %v331_v29 = vld [vmem:[#allocation2 + $0x29] sm:$0xff]  ;;  %v1933_v16 = vld [vmem:[%s2531_s1] sm:$0xff] }
  0x1d   : > { %2014 = vmatpush.bf16.msra.mxu2 %v1944_v17  ;;  %727 = vmatpush.bf16.msra.mxu3 %v1960_v20  ;;  %v338_v36 = vpack.c.bf16 %v331_v29, %v330_v28  ;;  %v2247_v63 = vld [vmem:[#allocation2 + $0x22] sm:$0xff]  ;;  %v1967_v2 = vld [vmem:[%s2531_s1 + $0x110] sm:$0xff]  ;;  %v305_v28 = vpack.c.bf16 %v2118_v6, %v2115_v5 }
  0x1e   : > { %v334_v31 = vld [vmem:[#allocation2 + $0x41] sm:$0xff]  ;;  %v2003_v5 = vld [vmem:[%s2531_s1 + $0x230] sm:$0xff] }
  0x1f   : > { %v335_v32 = vld [vmem:[#allocation2 + $0x49] sm:$0xff]  ;;  %v1949_v17 = vld [vmem:[%s2531_s1 + $0x80] sm:$0xff] }
  0x20   : > { %410 = vmatpush.bf16.msra.mxu0 %v1943_v21  ;;  %2015 = vmatpush.bf16.msra.mxu1 %v1943_v21  ;;  %v340_v37 = vpack.c.bf16 %v335_v32, %v334_v31  ;;  %v2199_v40 = vld [vmem:[#allocation2 + $0x12] sm:$0xff]  ;;  %v2245_v62 = vld [vmem:[#allocation2 + $0x1a] sm:$0xff]  ;;  %v1994_v4 = vld [vmem:[%s2531_s1 + $0x1e8] sm:$0xff] }
  0x21   : > { %2016 = vmatpush.bf16.msra.mxu2 %v1943_v21  ;;  %728 = vmatpush.bf16.msra.mxu3 %v1959_v22  ;;  %v654_v45 = vpack.c.bf16 %v2199_v40, %v2197_v39  ;;  %v328_v53 = vld [vmem:[#allocation2 + $0x11] sm:$0xff]  ;;  %v329_v54 = vld [vmem:[#allocation2 + $0x19] sm:$0xff]  ;;  %v655_v3 = vpack.c.bf16 %v2247_v63, %v2245_v62  ;;  %v1934_v9 = vld [vmem:[%s2531_s1 + $0x8] sm:$0xff] }
  0x22   : > { %v332_v55 = vld [vmem:[#allocation2 + $0x31] sm:$0xff]  ;;  %v333_v56 = vld [vmem:[#allocation2 + $0x39] sm:$0xff]  ;;  %v337_v60 = vpack.c.bf16 %v329_v54, %v328_v53  ;;  %v1950_v11 = vld [vmem:[%s2531_s1 + $0x88] sm:$0xff] }
  0x23   : > { %v339_v61 = vpack.c.bf16 %v333_v56, %v332_v55  ;;  %v1966_v14 = vld [vmem:[%s2531_s1 + $0x108] sm:$0xff]  ;;  %v1965_v21 = vld [vmem:[%s2531_s1 + $0x100] sm:$0xff]  ;;  %v1988_v22 = vld [vmem:[%s2531_s1 + $0x1b8] sm:$0xff] }
  0x24   : > { %411 = vmatpush.bf16.msra.mxu0 %v1942_v23  ;;  %2017 = vmatpush.bf16.msra.mxu1 %v1942_v23  ;;  %v521_v20 = vld [vmem:[#allocation2 + $0x2] sm:$0xff]  ;;  %v1979_v31 = vld [vmem:[%s2531_s1 + $0x170] sm:$0xff] }
  0x25   : > { %2018 = vmatpush.bf16.msra.mxu2 %v1942_v23  ;;  %729 = vmatpush.bf16.msra.mxu3 %v1958_v24  ;;  %v1980_v23 = vld [vmem:[%s2531_s1 + $0x178] sm:$0xff]  ;;  %v767_v24 = vld [vmem:[#allocation2 + $0xb] sm:$0xff]  ;;  %v531_v27 = vpack.c.bf16 %v2197_v39, %v521_v20  ;;  %v1993_v6 = vld [vmem:[%s2531_s1 + $0x1e0] sm:$0xff] }
  0x26   : > { %v2299_v32 = vld [vmem:[#allocation2 + $0x2a] sm:$0xff]  ;;  %v1977_v39 = vld [vmem:[%s2531_s1 + $0x160] sm:$0xff] }
  0x27   : > { %v1975_v53 = vld [vmem:[%s2531_s1 + $0x150] sm:$0xff]  ;;  %v1982_v54 = vld [vmem:[%s2531_s1 + $0x188] sm:$0xff]  ;;  %v1997_v20 = vld [vmem:[%s2531_s1 + $0x200] sm:$0xff] }
  0x28   : > { %412 = vmatpush.bf16.msra.mxu0 %v1941_v25  ;;  %2019 = vmatpush.bf16.msra.mxu1 %v1941_v25  ;;  %v1999_v55 = vld [vmem:[%s2531_s1 + $0x210] sm:$0xff]  ;;  %v1990_v56 = vld [vmem:[%s2531_s1 + $0x1c8] sm:$0xff] }
  0x29   : > { %2020 = vmatpush.bf16.msra.mxu2 %v1941_v25  ;;  %730 = vmatpush.bf16.msra.mxu3 %v1957_v38  ;;  %v768_v25 = vld [vmem:[#allocation2 + $0x13] sm:$0xff]  ;;  %v1985_v38 = vld [vmem:[%s2531_s1 + $0x1a0] sm:$0xff] }
  0x2a   : > { %v777_v29 = vpack.c.bf16 %v768_v25, %v767_v24  ;;  %v775_v24 = vld [vmem:[#allocation2 + $0x4b] sm:$0xff] }
  0x2b   : > { %413 = vmatmul.bf16.vlgmr.msra.gmra.mxu0 %v336_v35  ;;  %423 = vmatmul.bf16.vlgmr.msra.gmra.mxu1 %v338_v36  ;;  %v1986_v36 = vld [vmem:[%s2531_s1 + $0x1a8] sm:$0xff] }
  0x2c   : > { %487 = vmatpush.bf16.msrb.mxu1 %v1940_v30  ;;  %846 = vmatpush.bf16.msrb.mxu0 %v1972_v34  ;;  %v1987_v30 = vld [vmem:[%s2531_s1 + $0x1b0] sm:$0xff]  ;;  %v307_v34 = vpack.c.bf16 %v2132_v10, %v2125_v8  ;;  %v2002_v8 = vld [vmem:[%s2531_s1 + $0x228] sm:$0xff]  ;;  %v1992_v10 = vld [vmem:[%s2531_s1 + $0x1d8] sm:$0xff] }
  0x2d   : > { %600 = vmatpush.bf16.msrb.mxu2 %v1956_v33  ;;  %1215 = vmatpush.bf16.msrb.mxu3 %v1996_v42  ;;  %v2301_v33 = vld [vmem:[#allocation2 + $0x32] sm:$0xff]  ;;  %v769_v42 = vld [vmem:[#allocation2 + $0x1b] sm:$0xff] }
  0x2e   : > { %433 = vmatmul.bf16.vlgmr.msra.gmra.mxu2 %v340_v37  ;;  %731 = vmatmul.bf16.vlgmr.msra.gmra.mxu3 %v654_v45  ;;  %v656_v35 = vpack.c.bf16 %v2301_v33, %v2299_v32  ;;  %v1978_v37 = vld [vmem:[%s2531_s1 + $0x168] sm:$0xff]  ;;  %v1976_v45 = vld [vmem:[%s2531_s1 + $0x158] sm:$0xff] }
  0x30   : > { %488 = vmatpush.bf16.msrb.mxu1 %v1939_v41  ;;  %847 = vmatpush.bf16.msrb.mxu0 %v1971_v44  ;;  %v2001_v41 = vld [vmem:[%s2531_s1 + $0x220] sm:$0xff]  ;;  %v1984_v44 = vld [vmem:[%s2531_s1 + $0x198] sm:$0xff] }
  0x31   : > { %601 = vmatpush.bf16.msrb.mxu2 %v1955_v43  ;;  %1216 = vmatpush.bf16.msrb.mxu3 %v1995_v47  ;;  %v770_v43 = vld [vmem:[#allocation2 + $0x23] sm:$0xff]  ;;  %v306_v47 = vpack.c.bf16 %v2159_v18, %v2121_v7  ;;  %v1991_v18 = vld [vmem:[%s2531_s1 + $0x1d0] sm:$0xff] }
  0x34   : > { %489 = vmatpush.bf16.msrb.mxu1 %v1938_v46  ;;  %848 = vmatpush.bf16.msrb.mxu0 %v1970_v49  ;;  %v532_v46 = vpack.c.bf16 %v2245_v62, %v2199_v40  ;;  %v650_v49 = vld [vmem:[#allocation2 + $0x3a] sm:$0xff] }
  0x35   : > { %602 = vmatpush.bf16.msrb.mxu2 %v1954_v48  ;;  %1217 = vmatpush.bf16.msrb.mxu3 %v1994_v4  ;;  %v778_v48 = vpack.c.bf16 %v770_v43, %v769_v42  ;;  %v2000_v40 = vld [vmem:[%s2531_s1 + $0x218] sm:$0xff]  ;;  %v1973_v4 = vld [vmem:[%s2531_s1 + $0x140] sm:$0xff]  ;;  %v1262_v43 = vld [vmem:[#allocation2 + $0x2e] sm:$0xff] }
  0x36   : > { %v1261_v42 = vld [vmem:[#allocation2 + $0x26] sm:$0xff] }
  0x38   : > { %490 = vmatpush.bf16.msrb.mxu1 %v1937_v50  ;;  %849 = vmatpush.bf16.msrb.mxu0 %v1969_v52  ;;  %v2344_v50 = vld [vmem:[#allocation2 + $0x42] sm:$0xff]  ;;  %v1983_v52 = vld [vmem:[%s2531_s1 + $0x190] sm:$0xff] }
  0x39   : > { %603 = vmatpush.bf16.msrb.mxu2 %v1953_v51  ;;  %1218 = vmatpush.bf16.msrb.mxu3 %v1993_v6  ;;  %v280_v51 = vld [vmem:[%s2112_s12 + $0x58] sm:$0xff]  ;;  %v657_v7 = vpack.c.bf16 %v2344_v50, %v650_v49 }
  0x3a   : > { %293 = vst [vmem:[#allocation2 + $0x58] sm:$0xff] %v280_v51  ;;  %v281_v51 = vld [vmem:[%s2112_s12 + $0x60] sm:$0xff]  ;;  %s268_s12 = scalar_lea.vmem %s2536_s6, %s2538_s22 }
  0x3b   : > { %418 = vmatmul.bf16.gmra.mxu0 %v337_v60  ;;  %428 = vmatmul.bf16.gmra.mxu1 %v339_v61  ;;  %v652_v61 = vld [vmem:[#allocation2 + $0x4a] sm:$0xff]  ;;  %294 = vst [vmem:[#allocation2 + $0x60] sm:$0xff] %v281_v51 }
  0x3c   : > { %491 = vmatpush.bf16.msrb.mxu1 %v1936_v57  ;;  %850 = vmatpush.bf16.msrb.mxu0 %v1968_v59  ;;  %v771_v57 = vld [vmem:[#allocation2 + $0x2b] sm:$0xff]  ;;  %v533_v59 = vpack.c.bf16 %v2299_v32, %v2247_v63  ;;  %v1989_v63 = vld [vmem:[%s2531_s1 + $0x1c0] sm:$0xff]  ;;  %v1013_v32 = vld [vmem:[#allocation2 + $0x14] sm:$0xff] }
  0x3d   : > { %604 = vmatpush.bf16.msrb.mxu2 %v1952_v58  ;;  %1219 = vmatpush.bf16.msrb.mxu3 %v1992_v10  ;;  %v772_v58 = vld [vmem:[#allocation2 + $0x33] sm:$0xff] }
  0x3e   : > { %736 = vmatmul.bf16.gmra.mxu3 %v655_v3  ;;  %v779_v60 = vpack.c.bf16 %v772_v58, %v771_v57  ;;  %v1998_v3 = vld [vmem:[%s2531_s1 + $0x208] sm:$0xff]  ;;  %v1264_v57 = vld [vmem:[#allocation2 + $0x3e] sm:$0xff] }
  0x40   : > { %492 = vmatpush.bf16.msrb.mxu1 %v1935_v0  ;;  %851 = vmatpush.bf16.msrb.mxu0 %v1967_v2  ;;  %v1974_v0 = vld [vmem:[%s2531_s1 + $0x148] sm:$0xff]  ;;  %v1981_v2 = vld [vmem:[%s2531_s1 + $0x180] sm:$0xff] }
  0x41   : > { %605 = vmatpush.bf16.msrb.mxu2 %v1951_v1  ;;  %1220 = vmatpush.bf16.msrb.mxu3 %v1991_v18  ;;  %v653_v62 = vld [vmem:[#allocation2 + $0x52] sm:$0xff] }
  0x42   : > { %v658_v1 = vpack.c.bf16 %v653_v62, %v652_v61  ;;  %v776_v25 = vld [vmem:[#allocation2 + $0x53] sm:$0xff] }
  0x44   : > { %493 = vmatpush.bf16.msrb.mxu1 %v1934_v9  ;;  %852 = vmatpush.bf16.msrb.mxu0 %v1966_v14  ;;  %v773_v9 = vld [vmem:[#allocation2 + $0x3b] sm:$0xff]  ;;  %v534_v14 = vpack.c.bf16 %v650_v49, %v2301_v33  ;;  %v1142_v49 = vld [vmem:[#allocation2 + $0x45] sm:$0xff] }
  0x45   : > { %606 = vmatpush.bf16.msrb.mxu2 %v1950_v11  ;;  %1221 = vmatpush.bf16.msrb.mxu3 %v1990_v56  ;;  %v774_v11 = vld [vmem:[#allocation2 + $0x43] sm:$0xff]  ;;  %v1263_v56 = vld [vmem:[#allocation2 + $0x36] sm:$0xff] }
  0x46   : > { %v1014_v33 = vld [vmem:[#allocation2 + $0x1c] sm:$0xff] }
  0x47   : > { %v1023_v6 = vpack.c.bf16 %v1014_v33, %v1013_v32 }
  0x48   : > { %494 = vmatpush.bf16.msrb.mxu1 %v1933_v16  ;;  %853 = vmatpush.bf16.msrb.mxu0 %v1965_v21  ;;  %v308_v16 = vpack.c.bf16 %v2163_v19, %v2139_v12  ;;  %v1136_v21 = vld [vmem:[#allocation2 + $0x15] sm:$0xff]  ;;  %v309_v12 = vpack.c.bf16 %v2150_v15, %v2143_v13  ;;  %v781_v19 = vpack.c.bf16 %v776_v25, %v775_v24  ;;  %v890_v13 = vld [vmem:[#allocation2 + $0xc] sm:$0xff]  ;;  %v1403_v25 = vld [vmem:[%s2533_s3 + $0x43] sm:$0xff] }
  0x49   : > { %607 = vmatpush.bf16.msrb.mxu2 %v1949_v17  ;;  %1222 = vmatpush.bf16.msrb.mxu3 %v1989_v63  ;;  %v780_v17 = vpack.c.bf16 %v774_v11, %v773_v9  ;;  %v1259_v15 = vld [vmem:[#allocation2 + $0x16] sm:$0xff] }
  0x4b   : > { %495 = vmatmul.bf16.vlgmr.msrb.gmra.mxu1 %v305_v28  ;;  %854 = vmatmul.bf16.vlgmr.msrb.gmra.mxu0 %v777_v29  ;;  %v1139_v28 = vld [vmem:[#allocation2 + $0x2d] sm:$0xff] }
  0x4c   : > { %969 = vmatpush.bf16.msra.mxu1 %v1980_v23  ;;  %1338 = vmatpush.bf16.msra.mxu0 %v2004_v26  ;;  %v535_v26 = vpack.c.bf16 %v652_v61, %v2344_v50  ;;  %v1143_v50 = vld [vmem:[#allocation2 + $0x4d] sm:$0xff] }
  0x4d   : > { %1092 = vmatpush.bf16.msra.mxu2 %v1988_v22  ;;  %v1137_v22 = vld [vmem:[#allocation2 + $0x1d] sm:$0xff] }
  0x4e   : > { %608 = vmatmul.bf16.vlgmr.msrb.gmra.mxu2 %v531_v27  ;;  %741 = vmatmul.bf16.gmra.mxu3 %v656_v35  ;;  %v1146_v23 = vpack.c.bf16 %v1137_v22, %v1136_v21  ;;  %v1138_v27 = vld [vmem:[#allocation2 + $0x25] sm:$0xff] }
  0x4f   : > { %v1147_v29 = vpack.c.bf16 %v1139_v28, %v1138_v27  ;;  %v1265_v22 = vld [vmem:[#allocation2 + $0x46] sm:$0xff] }
  0x50   : > { %970 = vmatpush.bf16.msra.mxu1 %v1979_v31  ;;  %1339 = vmatpush.bf16.msra.mxu0 %v2003_v5  ;;  %v1396_v31 = vld [vmem:[%s2533_s3 + $0xb] sm:$0xff]  ;;  %v1260_v5 = vld [vmem:[#allocation2 + $0x1e] sm:$0xff] }
  0x51   : > { %1093 = vmatpush.bf16.msra.mxu2 %v1987_v30  ;;  %v2044_v30 = vmov 0   ;;  %v1269_v35 = vpack.c.bf16 %v1260_v5, %v1259_v15 }
  0x52   : > { %2032 = vset.pattern.permute.xlu0 %v2044_v30  ;;  %2033 = vset.pattern.permute.xlu1 %v2044_v30 }
  0x53   : > { %2034 = vset.pattern.permute.xlu2 %v2044_v30  ;;  %1408 = vperm.xlu0 %2032, %v1396_v31  }
  0x54   : > { %971 = vmatpush.bf16.msra.mxu1 %v1978_v37  ;;  %1340 = vmatpush.bf16.msra.mxu0 %v2002_v8  ;;  %v1141_v37 = vld [vmem:[#allocation2 + $0x3d] sm:$0xff]  ;;  %v1397_v8 = vld [vmem:[%s2533_s3 + $0x13] sm:$0xff] }
  0x55   : > { %1094 = vmatpush.bf16.msra.mxu2 %v1986_v36  ;;  %v1140_v36 = vld [vmem:[#allocation2 + $0x35] sm:$0xff] }
  0x56   : > { %v1148_v10 = vpack.c.bf16 %v1141_v37, %v1140_v36  ;;  %v1022_v36 = vld [vmem:[#allocation2 + $0x5c] sm:$0xff] }
  0x58   : > { %972 = vmatpush.bf16.msra.mxu1 %v1977_v39  ;;  %1341 = vmatpush.bf16.msra.mxu0 %v2001_v41  ;;  %v1015_v39 = vld [vmem:[#allocation2 + $0x24] sm:$0xff]  ;;  %v1016_v41 = vld [vmem:[#allocation2 + $0x2c] sm:$0xff] }
  0x59   : > { %1095 = vmatpush.bf16.msra.mxu2 %v1985_v38  ;;  %v1398_v38 = vld [vmem:[%s2533_s3 + $0x1b] sm:$0xff] }
  0x5a   : > { %1418 = vperm.xlu1 %2033, %v1398_v38   ;;  %v1268_v38 = vld [vmem:[#allocation2 + $0x5e] sm:$0xff] }
  0x5b   : > { %500 = vmatmul.bf16.gmra.mxu1 %v306_v47  ;;  %859 = vmatmul.bf16.gmra.mxu0 %v778_v48 }
  0x5c   : > { %973 = vmatpush.bf16.msra.mxu1 %v1976_v45  ;;  %1342 = vmatpush.bf16.msra.mxu0 %v2000_v40  ;;  %v901_v45 = vpack.c.bf16 %v1015_v39, %v1014_v33  ;;  %v1149_v40 = vpack.c.bf16 %v1143_v50, %v1142_v49 }
  0x5d   : > { %1096 = vmatpush.bf16.msra.mxu2 %v1984_v44  ;;  %1413 = vperm.xlu0 %2032, %v1397_v8   ;;  %v1024_v44 = vpack.c.bf16 %v1016_v41, %v1015_v39 }
  0x5e   : > { %613 = vmatmul.bf16.gmra.mxu2 %v532_v46  ;;  %746 = vmatmul.bf16.gmra.mxu3 %v657_v7  ;;  %v1270_v46 = vpack.c.bf16 %v1262_v43, %v1261_v42 }
  0x60   : > { %974 = vmatpush.bf16.msra.mxu1 %v1975_v53  ;;  %1343 = vmatpush.bf16.msra.mxu0 %v1999_v55  ;;  %v1017_v53 = vld [vmem:[#allocation2 + $0x34] sm:$0xff] }
  0x61   : > { %1097 = vmatpush.bf16.msra.mxu2 %v1983_v52  ;;  %v1399_v52 = vld [vmem:[%s2533_s3 + $0x23] sm:$0xff] }
  0x62   : > { %1423 = vperm.xlu1 %2033, %v1399_v52  }
  0x64   : > { %975 = vmatpush.bf16.msra.mxu1 %v1974_v0  ;;  %1344 = vmatpush.bf16.msra.mxu0 %v1998_v3  ;;  %v1144_v0 = vld [vmem:[#allocation2 + $0x55] sm:$0xff] }
  0x65   : > { %1098 = vmatpush.bf16.msra.mxu2 %v1982_v54  ;;  %v1018_v54 = vld [vmem:[#allocation2 + $0x3c] sm:$0xff] }
  0x66   : > { %v1025_v58 = vpack.c.bf16 %v1018_v54, %v1017_v53 }
  0x68   : > { %976 = vmatpush.bf16.msra.mxu1 %v1973_v4  ;;  %1345 = vmatpush.bf16.msra.mxu0 %v1997_v20 }
  0x69   : > { %1099 = vmatpush.bf16.msra.mxu2 %v1981_v2  ;;  %v1402_v2 = vld [vmem:[%s2533_s3 + $0x3b] sm:$0xff] }
  0x6a   : > { %1438 = vperm.xlu0 %2032, %v1402_v2   ;;  %1443 = vperm.xlu1 %2033, %v1403_v25  }
  0x6b   : > { %505 = vmatmul.bf16.gmra.mxu1 %v307_v34  ;;  %864 = vmatmul.bf16.gmra.mxu0 %v779_v60  ;;  %v900_v34 = vpack.c.bf16 %v1013_v32, %v890_v13  ;;  %v1271_v60 = vpack.c.bf16 %v1264_v57, %v1263_v56 }
  0x6e   : > { %618 = vmatmul.bf16.gmra.mxu2 %v533_v59  ;;  %751 = vmatmul.bf16.gmra.mxu3 %v658_v1  ;;  %v902_v59 = vpack.c.bf16 %v1017_v53, %v1016_v41  ;;  %v1145_v1 = vld [vmem:[#allocation2 + $0x5d] sm:$0xff] }
  0x6f   : > { %v1150_v4 = vpack.c.bf16 %v1145_v1, %v1144_v0 }
  0x7b   : > { %510 = vmatmul.bf16.gmra.mxu1 %v308_v16  ;;  %869 = vmatmul.bf16.gmra.mxu0 %v780_v17  ;;  %v1019_v16 = vld [vmem:[#allocation2 + $0x44] sm:$0xff]  ;;  %v1020_v17 = vld [vmem:[#allocation2 + $0x4c] sm:$0xff] }
  0x7c   : > { %v1026_v24 = vpack.c.bf16 %v1020_v17, %v1019_v16 }
  0x7e   : > { %623 = vmatmul.bf16.gmra.mxu2 %v534_v14  ;;  %1223 = vmatmul.bf16.vlgmr.msrb.gmra.mxu3 %v1146_v23  ;;  %v1405_v14 = vld [vmem:[%s2533_s3 + $0x53] sm:$0xff] }
  0x7f   : > { %1453 = vperm.xlu0 %2032, %v1405_v14   ;;  %v1266_v23 = vld [vmem:[#allocation2 + $0x4e] sm:$0xff] }
  0x8b   : > { %515 = vmatmul.bf16.gmra.mxu1 %v309_v12  ;;  %874 = vmatmul.bf16.gmra.mxu0 %v781_v19  ;;  %v1272_v12 = vpack.c.bf16 %v1266_v23, %v1265_v22 }
  0x8e   : > { %628 = vmatmul.bf16.gmra.mxu2 %v535_v26  ;;  %1228 = vmatmul.bf16.gmra.mxu3 %v1147_v29  ;;  %v903_v26 = vpack.c.bf16 %v1019_v16, %v1018_v54  ;;  %v1400_v29 = vld [vmem:[%s2533_s3 + $0x2b] sm:$0xff] }
  0x8f   : > { %1428 = vperm.xlu2 %2034, %v1400_v29  }
  0x9b   : > { %977 = vmatmul.bf16.vlgmr.msra.gmra.mxu1 %v900_v34  ;;  %1346 = vmatmul.bf16.vlgmr.msra.gmra.mxu0 %v1269_v35  ;;  %v1021_v35 = vld [vmem:[#allocation2 + $0x54] sm:$0xff] }
  0x9c   : > { %v1027_v41 = vpack.c.bf16 %v1022_v36, %v1021_v35  ;;  %v904_v43 = vpack.c.bf16 %v1021_v35, %v1020_v17 }
  0x9e   : > { %1100 = vmatmul.bf16.vlgmr.msra.gmra.mxu2 %v1023_v6  ;;  %1233 = vmatmul.bf16.gmra.mxu3 %v1148_v10  ;;  %v1401_v6 = vld [vmem:[%s2533_s3 + $0x33] sm:$0xff] }
  0x9f   : > { %1433 = vperm.xlu2 %2034, %v1401_v6   ;;  %v1267_v10 = vld [vmem:[#allocation2 + $0x56] sm:$0xff] }
  0xa8   : > { %v414_v47 = vpop.f32.mrf.mxu0  ;;  %v2404_v48 = vpop.f32.mrf.mxu1 }
  0xab   : > { %982 = vmatmul.bf16.gmra.mxu1 %v901_v45  ;;  %1351 = vmatmul.bf16.gmra.mxu0 %v1270_v46 }
  0xae   : > { %1105 = vmatmul.bf16.gmra.mxu2 %v1024_v44  ;;  %1238 = vmatmul.bf16.gmra.mxu3 %v1149_v40  ;;  %v1273_v44 = vpack.c.bf16 %v1268_v38, %v1267_v10 }
  0xb0   : > { %v416_v7 = vpop.f32.mrf.mxu0  ;;  %v2410_v18 = vpop.f32.mrf.mxu1 }
  0xb1   : > { %v732_v55 = vpop.f32.mrf.mxu3  ;;  %v2417_v3 = vpop.f32.mrf.mxu2 }
  0xb8   : > { %v419_v61 = vpop.f32.mrf.mxu0  ;;  %v2412_v62 = vpop.f32.mrf.mxu1 }
  0xb9   : > { %v734_v63 = vpop.f32.mrf.mxu3  ;;  %v2424_v21 = vpop.f32.mrf.mxu2 }
  0xbb   : > { %987 = vmatmul.bf16.gmra.mxu1 %v902_v59  ;;  %1356 = vmatmul.bf16.gmra.mxu0 %v1271_v60 }
  0xbe   : > { %1110 = vmatmul.bf16.gmra.mxu2 %v1025_v58  ;;  %1243 = vmatmul.bf16.gmra.mxu3 %v1150_v4 }
  0xc0   : > { %v421_v9 = vpop.f32.mrf.mxu0  ;;  %v2419_v11 = vpop.f32.mrf.mxu1 }
  0xc1   : > { %v737_v20 = vpop.f32.mrf.mxu3 }
  0xc8   : > { %v496_v19 = vpop.f32.mrf.mxu1  ;;  %v855_v27 = vpop.f32.mrf.mxu0 }
  0xc9   : > { %v497_v28 = vadd.f32 %v496_v19, %v414_v47  ;;  %v739_v30 = vpop.f32.mrf.mxu3 }
  0xcb   : > { %992 = vmatmul.bf16.gmra.mxu1 %v903_v26  ;;  %1361 = vmatmul.bf16.gmra.mxu0 %v1272_v12 }
  0xce   : > { %1115 = vmatmul.bf16.gmra.mxu2 %v1026_v24 }
  0xd0   : > { %v498_v13 = vpop.f32.mrf.mxu1  ;;  %v857_v15 = vpop.f32.mrf.mxu0 }
  0xd1   : > { %v609_v31 = vpop.f32.mrf.mxu2  ;;  %v499_v5 = vadd.f32 %v498_v13, %v416_v7  ;;  %v742_v37 = vpop.f32.mrf.mxu3  ;;  %v1404_v7 = vld [vmem:[%s2533_s3 + $0x4b] sm:$0xff]  ;;  %v2045_v13 = vmov 0.0  }
  0xd2   : > { %v634_v32 = vadd.f32 %v609_v31, %v497_v28  ;;  %1448 = vperm.xlu2 %2034, %v1404_v7   ;;  %1508 = vst [vmem:[%s2458_s30] sm:$0xff] %v2045_v13 }
  0xd3   : > { %1509 = vst [vmem:[%s2458_s30 + $0x8] sm:$0xff] %v2045_v13 }
  0xd4   : > { %v757_v33 = vadd.f32 %v732_v55, %v634_v32  ;;  %1510 = vst [vmem:[%s2458_s30 + $0x10] sm:$0xff] %v2045_v13 }
  0xd5   : > { %1520 = vst [vmem:[%s2458_s30 + $0x60] sm:$0xff] %v2045_v13 }
  0xd6   : > { %v2435_v34 = vadd.f32 %v855_v27, %v757_v33  ;;  %1511 = vst [vmem:[%s2458_s30 + $0x18] sm:$0xff] %v2045_v13 }
  0xd7   : > { %1512 = vst [vmem:[%s2458_s30 + $0x20] sm:$0xff] %v2045_v13 }
  0xd8   : > { %v501_v45 = vpop.f32.mrf.mxu1  ;;  %v860_v46 = vpop.f32.mrf.mxu0  ;;  %1513 = vst [vmem:[%s2458_s30 + $0x28] sm:$0xff] %v2045_v13 }
  0xd9   : > { %v611_v8 = vpop.f32.mrf.mxu2  ;;  %v502_v47 = vadd.f32 %v501_v45, %v419_v61  ;;  %v744_v50 = vpop.f32.mrf.mxu3  ;;  %1514 = vst [vmem:[%s2458_s30 + $0x30] sm:$0xff] %v2045_v13 }
  0xda   : > { %v635_v39 = vadd.f32 %v611_v8, %v499_v5  ;;  %1515 = vst [vmem:[%s2458_s30 + $0x38] sm:$0xff] %v2045_v13 }
  0xdb   : > { %997 = vmatmul.bf16.gmra.mxu1 %v904_v43  ;;  %1366 = vmatmul.bf16.gmra.mxu0 %v1273_v44  ;;  %1516 = vst [vmem:[%s2458_s30 + $0x40] sm:$0xff] %v2045_v13 }
  0xdc   : > { %v758_v42 = vadd.f32 %v734_v63, %v635_v39  ;;  %1517 = vst [vmem:[%s2458_s30 + $0x48] sm:$0xff] %v2045_v13 }
  0xdd   : > { %1518 = vst [vmem:[%s2458_s30 + $0x50] sm:$0xff] %v2045_v13 }
  0xde   : > { %1120 = vmatmul.bf16.gmra.mxu2 %v1027_v41  ;;  %v2437_v49 = vadd.f32 %v857_v15, %v758_v42  ;;  %1519 = vst [vmem:[%s2458_s30 + $0x58] sm:$0xff] %v2045_v13 }
  0xe0   : > { %v503_v53 = vpop.f32.mrf.mxu1  ;;  %v862_v54 = vpop.f32.mrf.mxu0 }
  0xe1   : > { %v614_v51 = vpop.f32.mrf.mxu2  ;;  %v504_v55 = vadd.f32 %v503_v53, %v421_v9  ;;  %v747_v57 = vpop.f32.mrf.mxu3 }
  0xe2   : > { %v636_v52 = vadd.f32 %v614_v51, %v502_v47 }
  0xe4   : > { %v759_v40 = vadd.f32 %v737_v20, %v636_v52 }
  0xe6   : > { %v2442_v56 = vadd.f32 %v860_v46, %v759_v40 }
  0xe8   : > { %v506_v61 = vpop.f32.mrf.mxu1  ;;  %v865_v0 = vpop.f32.mrf.mxu0 }
  0xe9   : > { %v616_v58 = vpop.f32.mrf.mxu2  ;;  %v507_v1 = vadd.f32 %v506_v61, %v2404_v48  ;;  %v749_v14 = vpop.f32.mrf.mxu3 }
  0xea   : > { %v637_v59 = vadd.f32 %v616_v58, %v504_v55  ;;  %v1409_v55 = vpop.permute.xlu0 %1408 }
  0xec   : > { %v760_v60 = vadd.f32 %v739_v30, %v637_v59 }
  0xee   : > { %v2445_v2 = vadd.f32 %v862_v54, %v760_v60 }
  0xf0   : > { %v508_v17 = vpop.f32.mrf.mxu1  ;;  %v867_v20 = vpop.f32.mrf.mxu0 }
  0xf1   : > { %v619_v63 = vpop.f32.mrf.mxu2  ;;  %v509_v9 = vadd.f32 %v508_v17, %v2410_v18  ;;  %v752_v26 = vpop.f32.mrf.mxu3 }
  0xf2   : > { %v638_v4 = vadd.f32 %v619_v63, %v507_v1 }
  0xf4   : > { %v761_v16 = vadd.f32 %v742_v37, %v638_v4 }
  0xf6   : > { %v2448_v22 = vadd.f32 %v865_v0, %v761_v16 }
  0xf8   : > { %v511_v12 = vpop.f32.mrf.mxu1  ;;  %v870_v19 = vpop.f32.mrf.mxu0 }
  0xf9   : > { %v621_v23 = vpop.f32.mrf.mxu2  ;;  %v512_v48 = vadd.f32 %v511_v12, %v2412_v62  ;;  %v754_v32 = vpop.f32.mrf.mxu3 }
  0xfa   : > { %v639_v24 = vadd.f32 %v621_v23, %v509_v9  ;;  %v1414_v9 = vpop.permute.xlu0 %1413 }
  0xfc   : > { %v762_v25 = vadd.f32 %v744_v50, %v639_v24 }
  0xfe   : > { %v2451_v27 = vadd.f32 %v867_v20, %v762_v25 }
 0x100   : > { %v513_v18 = vpop.f32.mrf.mxu1  ;;  %v872_v31 = vpop.f32.mrf.mxu0 }
 0x101   : > { %v624_v28 = vpop.f32.mrf.mxu2  ;;  %v514_v62 = vadd.f32 %v513_v18, %v2419_v11  ;;  %v1224_v8 = vpop.f32.mrf.mxu3 }
 0x102   : > { %v640_v29 = vadd.f32 %v624_v28, %v512_v48 }
 0x104   : > { %v763_v30 = vadd.f32 %v747_v57, %v640_v29  ;;  %v1419_v29 = vpop.permute.xlu1 %1418 }
 0x106   : > { %v2461_v33 = vadd.f32 %v870_v19, %v763_v30 }
 0x108   : > { %v516_v11 = vpop.f32.mrf.mxu1  ;;  %v875_v35 = vpop.f32.mrf.mxu0 }
 0x109   : > { %v626_v15 = vpop.f32.mrf.mxu2  ;;  %v517_v36 = vadd.f32 %v516_v11, %v2417_v3  ;;  %v1226_v46 = vpop.f32.mrf.mxu3 }
 0x10a   : > { %v641_v5 = vadd.f32 %v626_v15, %v514_v62 }
 0x10c   : > { %v764_v6 = vadd.f32 %v749_v14, %v641_v5 }
 0x10e   : > { %v2472_v37 = vadd.f32 %v872_v31, %v764_v6 }
 0x110   : > { %v518_v41 = vpop.f32.mrf.mxu1  ;;  %v877_v42 = vpop.f32.mrf.mxu0 }
 0x111   : > { %v629_v10 = vpop.f32.mrf.mxu2  ;;  %v519_v43 = vadd.f32 %v518_v41, %v2424_v21  ;;  %v2488_v21 = vld [vmem:[%s2532_s2] ss:$0 sm:$0xff]  ;;  %v1229_v57 = vpop.f32.mrf.mxu3 }
 0x112   : > { %v642_v38 = vadd.f32 %v629_v10, %v517_v36 }
 0x114   : > { %v765_v39 = vadd.f32 %v752_v26, %v642_v38 }
 0x116   : > { %v2480_v44 = vadd.f32 %v875_v35, %v765_v39 }
 0x118   : > { %v978_v50 = vpop.f32.mrf.mxu1  ;;  %v1347_v51 = vpop.f32.mrf.mxu0 }
 0x119   : > { %v631_v45 = vpop.f32.mrf.mxu2  ;;  %v1003_v52 = vadd.f32 %v978_v50, %v2435_v34  ;;  %v1231_v23 = vpop.f32.mrf.mxu3 }
 0x11a   : > { %v643_v3 = vadd.f32 %v631_v45, %v519_v43 }
 0x11c   : > { %v766_v47 = vadd.f32 %v754_v32, %v643_v3 }
 0x11e   : > { %v2483_v40 = vadd.f32 %v877_v42, %v766_v47  ;;  %v1424_v42 = vpop.permute.xlu1 %1423 }
 0x120   : > { %v980_v58 = vpop.f32.mrf.mxu1  ;;  %v1349_v59 = vpop.f32.mrf.mxu0 }
 0x121   : > { %v1101_v7 = vpop.f32.mrf.mxu2  ;;  %v1004_v60 = vadd.f32 %v980_v58, %v2437_v49  ;;  %v1234_v15 = vpop.f32.mrf.mxu3 }
 0x122   : > { %v1126_v53 = vadd.f32 %v1101_v7, %v1003_v52  ;;  %v1429_v52 = vpop.permute.xlu2 %1428 }
 0x124   : > { %v1249_v54 = vadd.f32 %v1224_v8, %v1126_v53 }
 0x126   : > { %v1372_v61 = vadd.f32 %v1347_v51, %v1249_v54 }
 0x128   : > { %v1386_v34 = vadd.f32 %v2488_v21, %v1372_v61  ;;  %v983_v14 = vpop.f32.mrf.mxu1  ;;  %v1352_v16 = vpop.f32.mrf.mxu0 }
 0x129   : > { %v1103_v0 = vpop.f32.mrf.mxu2  ;;  %v1005_v17 = vadd.f32 %v983_v14, %v2442_v56 }
 0x12a   : > { %v1456_v1 = vmul.f32 %v1409_v55, %v1386_v34  ;;  %v1127_v63 = vadd.f32 %v1103_v0, %v1004_v60 }
 0x12c   : > { %1521 = vst [vmem:[%s2458_s30 + $0xb] sm:$0xff] %v1456_v1  ;;  %v1250_v4 = vadd.f32 %v1226_v46, %v1127_v63  ;;  %v1482_v12 = vmul.f32 %v1456_v1, %v1456_v1  ;;  %v1236_v46 = vpop.f32.mrf.mxu3 }
 0x12e   : > { %v1373_v20 = vadd.f32 %v1349_v59, %v1250_v4 }
 0x130   : > { %v1387_v24 = vadd.f32 %v2488_v21, %v1373_v20  ;;  %v985_v30 = vpop.f32.mrf.mxu1  ;;  %v1354_v18 = vpop.f32.mrf.mxu0 }
 0x131   : > { %v1106_v25 = vpop.f32.mrf.mxu2  ;;  %v1006_v56 = vadd.f32 %v985_v30, %v2445_v2  ;;  %v1434_v20 = vpop.permute.xlu2 %1433 }
 0x132   : > { %v1457_v49 = vmul.f32 %v1414_v9, %v1387_v24  ;;  %v1128_v26 = vadd.f32 %v1106_v25, %v1005_v17 }
 0x134   : > { %v1466_v19 = vadd.f32 %v1457_v49, %v1456_v1  ;;  %v1483_v48 = vmul.f32 %v1457_v49, %v1457_v49  ;;  %1522 = vst [vmem:[%s2458_s30 + $0x13] sm:$0xff] %v1457_v49  ;;  %v1251_v28 = vadd.f32 %v1229_v57, %v1128_v26  ;;  %v1239_v1 = vpop.f32.mrf.mxu3 }
 0x136   : > { %v1492_v31 = vadd.f32 %v1483_v48, %v1482_v12  ;;  %v1374_v62 = vadd.f32 %v1352_v16, %v1251_v28 }
 0x138   : > { %v1388_v32 = vadd.f32 %v2488_v21, %v1374_v62  ;;  %v988_v8 = vpop.f32.mrf.mxu1  ;;  %v1357_v10 = vpop.f32.mrf.mxu0 }
 0x139   : > { %v1108_v13 = vpop.f32.mrf.mxu2  ;;  %v1007_v39 = vadd.f32 %v988_v8, %v2448_v22 }
 0x13a   : > { %v1458_v5 = vmul.f32 %v1419_v29, %v1388_v32  ;;  %v1129_v6 = vadd.f32 %v1108_v13, %v1006_v56 }
 0x13c   : > { %v1467_v11 = vadd.f32 %v1466_v19, %v1458_v5  ;;  %v1484_v35 = vmul.f32 %v1458_v5, %v1458_v5  ;;  %1523 = vst [vmem:[%s2458_s30 + $0x1b] sm:$0xff] %v1458_v5  ;;  %v1252_v36 = vadd.f32 %v1231_v23, %v1129_v6  ;;  %v1241_v29 = vpop.f32.mrf.mxu3 }
 0x13e   : > { %v1493_v38 = vadd.f32 %v1492_v31, %v1484_v35  ;;  %v1375_v41 = vadd.f32 %v1354_v18, %v1252_v36  ;;  %v1444_v36 = vpop.permute.xlu1 %1443 }
 0x140   : > { %v1389_v2 = vadd.f32 %v2488_v21, %v1375_v41  ;;  %v990_v7 = vpop.f32.mrf.mxu1  ;;  %v1359_v53 = vpop.f32.mrf.mxu0 }
 0x141   : > { %v1111_v43 = vpop.f32.mrf.mxu2  ;;  %v1008_v55 = vadd.f32 %v990_v7, %v2451_v27 }
 0x142   : > { %v1459_v45 = vmul.f32 %v1424_v42, %v1389_v2  ;;  %v1130_v3 = vadd.f32 %v1111_v43, %v1007_v39 }
 0x144   : > { %v1468_v47 = vadd.f32 %v1467_v11, %v1459_v45  ;;  %v1485_v50 = vmul.f32 %v1459_v45, %v1459_v45  ;;  %1524 = vst [vmem:[%s2458_s30 + $0x23] sm:$0xff] %v1459_v45  ;;  %v1253_v51 = vadd.f32 %v1234_v15, %v1130_v3  ;;  %v1244_v8 = vpop.f32.mrf.mxu3 }
 0x146   : > { %v1494_v54 = vadd.f32 %v1493_v38, %v1485_v50  ;;  %v1376_v22 = vadd.f32 %v1357_v10, %v1253_v51  ;;  %v1449_v50 = vpop.permute.xlu2 %1448 }
 0x148   : > { %v1390_v57 = vadd.f32 %v2488_v21, %v1376_v22  ;;  %v993_v63 = vpop.f32.mrf.mxu1  ;;  %v1362_v17 = vpop.f32.mrf.mxu0 }
 0x149   : > { %v1113_v58 = vpop.f32.mrf.mxu2  ;;  %v1009_v14 = vadd.f32 %v993_v63, %v2461_v33  ;;  %v1439_v33 = vpop.permute.xlu0 %1438 }
 0x14a   : > { %v1460_v59 = vmul.f32 %v1429_v52, %v1390_v57  ;;  %v1131_v60 = vadd.f32 %v1113_v58, %v1008_v55 }
 0x14c   : > { %v1469_v61 = vadd.f32 %v1468_v47, %v1460_v59  ;;  %v1486_v34 = vmul.f32 %v1460_v59, %v1460_v59  ;;  %1525 = vst [vmem:[%s2458_s30 + $0x2b] sm:$0xff] %v1460_v59  ;;  %v1254_v0 = vadd.f32 %v1236_v46, %v1131_v60 }
 0x14e   : > { %v1495_v4 = vadd.f32 %v1494_v54, %v1486_v34  ;;  %v1377_v16 = vadd.f32 %v1359_v53, %v1254_v0  ;;  %v1246_v53 = vpop.f32.mrf.mxu3 }
 0x150   : > { %v1391_v27 = vadd.f32 %v2488_v21, %v1377_v16  ;;  %v995_v12 = vpop.f32.mrf.mxu1  ;;  %v1364_v18 = vpop.f32.mrf.mxu0 }
 0x151   : > { %v1116_v9 = vpop.f32.mrf.mxu2  ;;  %v1010_v28 = vadd.f32 %v995_v12, %v2472_v37 }
 0x152   : > { %v1461_v23 = vmul.f32 %v1434_v20, %v1391_v27  ;;  %v1132_v24 = vadd.f32 %v1116_v9, %v1009_v14 }
 0x154   : > { %v1470_v25 = vadd.f32 %v1469_v61, %v1461_v23  ;;  %v1487_v49 = vmul.f32 %v1461_v23, %v1461_v23  ;;  %1526 = vst [vmem:[%s2458_s30 + $0x33] sm:$0xff] %v1461_v23  ;;  %v1255_v26 = vadd.f32 %v1239_v1, %v1132_v24  ;;  %v1454_v61 = vpop.permute.xlu0 %1453 }
 0x156   : > { %v1496_v19 = vadd.f32 %v1495_v4, %v1487_v49  ;;  %v1378_v48 = vadd.f32 %v1362_v17, %v1255_v26 }
 0x158   : > { %v1392_v30 = vadd.f32 %v2488_v21, %v1378_v48  ;;  %v998_v5 = vpop.f32.mrf.mxu1  ;;  %v1367_v41 = vpop.f32.mrf.mxu0 }
 0x159   : > { %v1118_v31 = vpop.f32.mrf.mxu2  ;;  %v1011_v35 = vadd.f32 %v998_v5, %v2480_v44 }
 0x15a   : > { %v1462_v56 = vmul.f32 %v1439_v33, %v1392_v30  ;;  %v1133_v62 = vadd.f32 %v1118_v31, %v1010_v28 }
 0x15c   : > { %1527 = vst [vmem:[%s2458_s30 + $0x3b] sm:$0xff] %v1462_v56  ;;  %v1256_v32 = vadd.f32 %v1241_v29, %v1133_v62  ;;  %v1471_v13 = vadd.f32 %v1470_v25, %v1462_v56  ;;  %v1488_v15 = vmul.f32 %v1462_v56, %v1462_v56 }
 0x15e   : > { %v1379_v6 = vadd.f32 %v1364_v18, %v1256_v32  ;;  %v1497_v11 = vadd.f32 %v1496_v19, %v1488_v15 }
 0x160   : > { %v1393_v37 = vadd.f32 %v2488_v21, %v1379_v6  ;;  %v1000_v45 = vpop.f32.mrf.mxu1  ;;  %v1369_v57 = vpop.f32.mrf.mxu0 }
 0x161   : > { %v1121_v10 = vpop.f32.mrf.mxu2  ;;  %v1012_v47 = vadd.f32 %v1000_v45, %v2483_v40 }
 0x162   : > { %v1463_v38 = vmul.f32 %v1444_v36, %v1393_v37  ;;  %v1134_v39 = vadd.f32 %v1121_v10, %v1011_v35 }
 0x164   : > { %v1472_v42 = vadd.f32 %v1471_v13, %v1463_v38  ;;  %v1489_v2 = vmul.f32 %v1463_v38, %v1463_v38  ;;  %1528 = vst [vmem:[%s2458_s30 + $0x43] sm:$0xff] %v1463_v38  ;;  %v1257_v43 = vadd.f32 %v1244_v8, %v1134_v39 }
 0x166   : > { %v1498_v3 = vadd.f32 %v1497_v11, %v1489_v2  ;;  %v1380_v46 = vadd.f32 %v1367_v41, %v1257_v43 }
 0x168   : > { %v1394_v44 = vadd.f32 %v2488_v21, %v1380_v46 }
 0x169   : > { %v1123_v51 = vpop.f32.mrf.mxu2 }
 0x16a   : > { %v1464_v52 = vmul.f32 %v1449_v50, %v1394_v44  ;;  %v1135_v7 = vadd.f32 %v1123_v51, %v1012_v47 }
 0x16c   : > { %v1473_v54 = vadd.f32 %v1472_v42, %v1464_v52  ;;  %v1490_v55 = vmul.f32 %v1464_v52, %v1464_v52  ;;  %1529 = vst [vmem:[%s2458_s30 + $0x4b] sm:$0xff] %v1464_v52  ;;  %v1258_v22 = vadd.f32 %v1246_v53, %v1135_v7 }
 0x16e   : > { %v1499_v58 = vadd.f32 %v1498_v3, %v1490_v55  ;;  %v1381_v59 = vadd.f32 %v1369_v57, %v1258_v22 }
 0x170   : > { %v1395_v60 = vadd.f32 %v2488_v21, %v1381_v59 }
 0x172   : > { %v1465_v40 = vmul.f32 %v1454_v61, %v1395_v60 }
 0x174   : > { %v1474_v34 = vadd.f32 %v1473_v54, %v1465_v40  ;;  %v1491_v0 = vmul.f32 %v1465_v40, %v1465_v40  ;;  %1530 = vst [vmem:[%s2458_s30 + $0x53] sm:$0xff] %v1465_v40 }
 0x176   : > { %v1475_v1 = vrot.slane %v1474_v34, 4  ;;  %v1500_v63 = vadd.f32 %v1499_v58, %v1491_v0 }
 0x178   : > { %v1476_v4 = vadd.f32 %v1475_v1, %v1474_v34  ;;  %v1501_v14 = vrot.slane %v1500_v63, 4 }
 0x17a   : > { %v1477_v16 = vrot.slane %v1476_v4, 2  ;;  %v1502_v17 = vadd.f32 %v1501_v14, %v1500_v63 }
 0x17c   : > { %v1478_v20 = vadd.f32 %v1477_v16, %v1476_v4  ;;  %v1503_v27 = vrot.slane %v1502_v17, 2 }
 0x17e   : > { %v1479_v9 = vrot.slane %v1478_v20, 1  ;;  %v1504_v23 = vadd.f32 %v1503_v27, %v1502_v17 }
 0x180   : > { %v1480_v21 = vadd.f32 %v1479_v9, %v1478_v20  ;;  %v1505_v24 = vrot.slane %v1504_v23, 1 }
 0x182   : > { %1481 = vst [vmem:[%s265_s11] sm:$0x1] %v1480_v21  ;;  %v1506_v25 = vadd.f32 %v1505_v24, %v1504_v23 }
 0x184   : > { %1507 = vst [vmem:[%s268_s12] sm:$0x1] %v1506_v25 }
 0x185 PF: > { %s17_s21 = sadd.s32 1, %s2042_s21  }
 0x186   : > { %p14_p4 = scmp.ge.s32.totalorder %s17_s21, 4  }
 0x188   :  { %16 = sbr.rel (!%p14_p4) target bundleno = 1 (0x1), region = 90 }

// kernel: encoder_block_forward.4
= control target key start
LH: loop header
LB: loop body
LE: loop exit
PB: predicated region body
PF: predicated region fallthrough
CT: control target
= control target key end

     0   :  { %s2285_s27 = smov 0   ;;  %s2794_s0 = inlined_call_operand.vmem [shape: f32[2,104,128], index: 0, kind: input, shape index: {}]   ;;  %s2795_s1 = inlined_call_operand.vmem [shape: bf16[1152,128], index: 1, kind: input, shape index: {}]   ;;  %s2796_s2 = inlined_call_operand.vmem [shape: f32[1,128], index: 2, kind: input, shape index: {}]   ;;  %s2797_s3 = inlined_call_operand.vmem [shape: f32[104,1], index: 3, kind: input, shape index: {}]   ;;  %s2798_s4 = inlined_call_operand.vmem [shape: f32[1,128], index: 4, kind: input, shape index: {}]   ;;  %s2799_s5 = inlined_call_operand.vmem [shape: f32[1,128], index: 5, kind: input, shape index: {}]   ;;  %s2800_s6 = inlined_call_operand.vmem [shape: f32[2,104,128], index: 6, kind: output, shape index: {0}]   ;;  %s2801_s7 = inlined_call_operand.vmem [shape: f32[2,1,128], index: 7, kind: output, shape index: {1}]   ;;  %s2802_s8 = inlined_call_operand.vmem [shape: f32[2,1,128], index: 8, kind: output, shape index: {2}]  }
   0x1 LB: > { %s1828_s28 = sadd.s32 4294967295, %s2236_s27   ;;  %p1832_p0 = scmp.ge.s32.totalorder %s2236_s27, 1  ;;  %s2236_s27 = sphi %s2285_s27, %s19_s27  }
   0x2   : > { %p267_p1 = scmp.lt.s32.totalorder %s2236_s27, 3 }
   0x4   : > { %p268_p2 = pnand %p1832_p0, %p267_p1 }
   0x5   : > { %p307_p3 = scmp.lt.s32.totalorder (!%p268_p2), %s1828_s28, 1 }
   0x6   : > { %271 = sbr.rel (%p268_p2) target bundleno = 489 (0x1e9), region = 44 }
   0xb   : > { %v389_v0 = vld [vmem:[%s2797_s3 + $0x30] sm:$0xff]  ;;  %v387_v1 = vld [vmem:[%s2797_s3 + $0x20] sm:$0xff]  ;;  %v384_v2 = vld [vmem:[%s2797_s3 + $0x8] sm:$0xff]  ;;  %v2238_v3 = vmov 0   ;;  %s2804_s28 = smov (!%p307_p3, %s1828_s28), 1 }
   0xc   : > { %2226 = vset.pattern.permute.xlu2 %v2238_v3  ;;  %2225 = vset.pattern.permute.xlu1 %v2238_v3  ;;  %v383_v4 = vld [vmem:[%s2797_s3] sm:$0xff]  ;;  %v388_v5 = vld [vmem:[%s2797_s3 + $0x28] sm:$0xff]  ;;  %v385_v6 = vld [vmem:[%s2797_s3 + $0x10] sm:$0xff]  ;;  %s2213_s17 = smul.u32 104, %s2804_s28  ;;  %s319_s23 = scalar_lea.vmem %s2801_s7, %s2804_s28 }
   0xd   : > { %2224 = vset.pattern.permute.xlu0 %v2238_v3  ;;  %428 = vperm.xlu1 %2225, %v389_v0   ;;  %v392_v7 = vld [vmem:[%s2797_s3 + $0x48] sm:$0xff]  ;;  %v391_v8 = vld [vmem:[%s2797_s3 + $0x40] sm:$0xff]  ;;  %v393_v9 = vld [vmem:[%s2797_s3 + $0x50] sm:$0xff]  ;;  %s322_s26 = scalar_lea.vmem %s2802_s8, %s2804_s28 }
   0xe   : > { %418 = vperm.xlu0 %2224, %v387_v1   ;;  %403 = vperm.xlu2 %2226, %v384_v2   ;;  %v386_v10 = vld [vmem:[%s2797_s3 + $0x18] sm:$0xff]  ;;  %v1588_v13 = vld [vmem:[%s2797_s3 + $0xb] sm:$0xff]  ;;  %v395_v14 = vld [vmem:[%s2797_s3 + $0x60] sm:$0xff]  ;;  %s2383_s22 = scalar_lea.vmem %s2794_s0, %s2213_s17  ;;  %s2725_s18 = scalar_lea.vmem %s2800_s6, %s2213_s17 }
   0xf   : > { %v390_v11 = vld [vmem:[%s2797_s3 + $0x38] sm:$0xff]  ;;  %v1591_v16 = vld [vmem:[%s2797_s3 + $0x23] sm:$0xff]  ;;  %v1592_v18 = vld [vmem:[%s2797_s3 + $0x2b] sm:$0xff] }
  0x10   : > { %v394_v12 = vld [vmem:[%s2797_s3 + $0x58] sm:$0xff]  ;;  %v1595_v21 = vld [vmem:[%s2797_s3 + $0x43] sm:$0xff]  ;;  %v1596_v23 = vld [vmem:[%s2797_s3 + $0x4b] sm:$0xff] }
  0x11   : > { %v1589_v15 = vld [vmem:[%s2797_s3 + $0x13] sm:$0xff]  ;;  %v1590_v17 = vld [vmem:[%s2797_s3 + $0x1b] sm:$0xff]  ;;  %v2138_v26 = vld [vmem:[%s2795_s1 + $0x68] sm:$0xff] }
  0x12   : > { %v1594_v19 = vld [vmem:[%s2797_s3 + $0x3b] sm:$0xff]  ;;  %v1593_v20 = vld [vmem:[%s2797_s3 + $0x33] sm:$0xff]  ;;  %v324_v27 = vld [vmem:[%s2383_s22 + $0x8] sm:$0xff] }
  0x13   : > { %v1597_v22 = vld [vmem:[%s2797_s3 + $0x53] sm:$0xff]  ;;  %v2389_v28 = vld [vmem:[%s2798_s4] ss:$0 sm:$0xff]  ;;  %v2134_v39 = vld [vmem:[%s2795_s1 + $0x48] sm:$0xff] }
  0x14   : > { %v2140_v24 = vld [vmem:[%s2795_s1 + $0x78] sm:$0xff]  ;;  %v2139_v25 = vld [vmem:[%s2795_s1 + $0x70] sm:$0xff]  ;;  %v2137_v29 = vld [vmem:[%s2795_s1 + $0x60] sm:$0xff]  ;;  %v341_v30 = vmul.f32 %v2389_v28, %v324_v27 }
  0x15   : > { %398 = vperm.xlu1 %2225, %v383_v4   ;;  %2198 = vmatpush.bf16.msra.mxu2 %v2140_v24  ;;  %v2398_v31 = vld [vmem:[%s2799_s5] ss:$0 sm:$0xff]  ;;  %v2136_v32 = vld [vmem:[%s2795_s1 + $0x58] sm:$0xff]  ;;  %v325_v34 = vld [vmem:[%s2383_s22 + $0x10] sm:$0xff] }
  0x16   : > { %423 = vperm.xlu0 %2224, %v388_v5   ;;  %408 = vperm.xlu2 %2226, %v385_v6   ;;  %v358_v33 = vadd.f32 %v2398_v31, %v341_v30  ;;  %v2135_v35 = vld [vmem:[%s2795_s1 + $0x50] sm:$0xff]  ;;  %v2156_v36 = vld [vmem:[%s2795_s1 + $0xf8] sm:$0xff]  ;;  %v342_v38 = vmul.f32 %v2389_v28, %v325_v34  ;;  %v2133_v45 = vld [vmem:[%s2795_s1 + $0x40] sm:$0xff] }
  0x17   : > { %597 = vmatpush.bf16.msra.mxu0 %v2140_v24  ;;  %2197 = vmatpush.bf16.msra.mxu1 %v2140_v24  ;;  %v2155_v41 = vld [vmem:[%s2795_s1 + $0xf0] sm:$0xff]  ;;  %v2148_v46 = vld [vmem:[%s2795_s1 + $0xb8] sm:$0xff]  ;;  %v2154_v47 = vld [vmem:[%s2795_s1 + $0xe8] sm:$0xff] }
  0x18   : > { %v371_v37 = vmax.f32 %v358_v33, 0.0  ;;  %915 = vmatpush.bf16.msra.mxu3 %v2156_v36  ;;  %v359_v43 = vadd.f32 %v2398_v31, %v342_v38  ;;  %v333_v44 = vld [vmem:[%s2383_s22 + $0x50] sm:$0xff]  ;;  %v2153_v52 = vld [vmem:[%s2795_s1 + $0xe0] sm:$0xff]  ;;  %v334_v57 = vld [vmem:[%s2383_s22 + $0x58] sm:$0xff] }
  0x19   : > { %2200 = vmatpush.bf16.msra.mxu2 %v2139_v25  ;;  %v350_v49 = vmul.f32 %v2389_v28, %v333_v44  ;;  %v2147_v51 = vld [vmem:[%s2795_s1 + $0xb0] sm:$0xff]  ;;  %v327_v56 = vld [vmem:[%s2383_s22 + $0x20] sm:$0xff]  ;;  %v2132_v59 = vld [vmem:[%s2795_s1 + $0x38] sm:$0xff]  ;;  %v351_v0 = vmul.f32 %v2389_v28, %v334_v57 }
  0x1a   : > { %v372_v48 = vmax.f32 %v359_v43, 0.0  ;;  %v329_v55 = vld [vmem:[%s2383_s22 + $0x30] sm:$0xff]  ;;  %v2146_v60 = vld [vmem:[%s2795_s1 + $0xa8] sm:$0xff]  ;;  %v2152_v61 = vld [vmem:[%s2795_s1 + $0xd8] sm:$0xff]  ;;  %v344_v63 = vmul.f32 %v2389_v28, %v327_v56 }
  0x1b   : > { %598 = vmatpush.bf16.msra.mxu0 %v2139_v25  ;;  %2199 = vmatpush.bf16.msra.mxu1 %v2139_v25  ;;  %v367_v54 = vadd.f32 %v2398_v31, %v350_v49  ;;  %v346_v58 = vmul.f32 %v2389_v28, %v329_v55  ;;  %v2164_v1 = vld [vmem:[%s2795_s1 + $0x138] sm:$0xff]  ;;  %v2131_v4 = vld [vmem:[%s2795_s1 + $0x30] sm:$0xff]  ;;  %v2145_v5 = vld [vmem:[%s2795_s1 + $0xa0] sm:$0xff] }
  0x1c   : > { %916 = vmatpush.bf16.msra.mxu3 %v2155_v41  ;;  %v2151_v6 = vld [vmem:[%s2795_s1 + $0xd0] sm:$0xff]  ;;  %v2129_v27 = vld [vmem:[%s2795_s1 + $0x20] sm:$0xff]  ;;  %v2142_v41 = vld [vmem:[%s2795_s1 + $0x88] sm:$0xff] }
  0x1d   : > { %443 = vperm.xlu1 %2225, %v392_v7   ;;  %2202 = vmatpush.bf16.msra.mxu2 %v2138_v26  ;;  %v380_v62 = vmax.f32 %v367_v54, 0.0  ;;  %v363_v3 = vadd.f32 %v2398_v31, %v346_v58  ;;  %v2149_v30 = vld [vmem:[%s2795_s1 + $0xc0] sm:$0xff]  ;;  %v2160_v43 = vld [vmem:[%s2795_s1 + $0x118] sm:$0xff]  ;;  %v2126_v58 = vld [vmem:[%s2795_s1 + $0x8] sm:$0xff] }
  0x1e   : > { %438 = vperm.xlu0 %2224, %v391_v8   ;;  %448 = vperm.xlu2 %2226, %v393_v9   ;;  %v361_v8 = vadd.f32 %v2398_v31, %v344_v63  ;;  %v368_v9 = vadd.f32 %v2398_v31, %v351_v0  ;;  %v2161_v36 = vld [vmem:[%s2795_s1 + $0x120] sm:$0xff]  ;;  %v326_v56 = vld [vmem:[%s2383_s22 + $0x18] sm:$0xff] }
  0x1f   : > { %599 = vmatpush.bf16.msra.mxu0 %v2138_v26  ;;  %2201 = vmatpush.bf16.msra.mxu1 %v2138_v26  ;;  %v330_v57 = vld [vmem:[%s2383_s22 + $0x38] sm:$0xff] }
  0x20   : > { %917 = vmatpush.bf16.msra.mxu3 %v2154_v47  ;;  %v347_v0 = vmul.f32 %v2389_v28, %v330_v57  ;;  %v2170_v57 = vld [vmem:[%s2795_s1 + $0x168] sm:$0xff] }
  0x21   : > { %2204 = vmatpush.bf16.msra.mxu2 %v2137_v29 }
  0x23   : > { %600 = vmatpush.bf16.msra.mxu0 %v2137_v29  ;;  %2203 = vmatpush.bf16.msra.mxu1 %v2137_v29  ;;  %v2143_v29 = vld [vmem:[%s2795_s1 + $0x90] sm:$0xff] }
  0x24   : > { %918 = vmatpush.bf16.msra.mxu3 %v2153_v52  ;;  %v2159_v52 = vld [vmem:[%s2795_s1 + $0x110] sm:$0xff] }
  0x25   : > { %413 = vperm.xlu1 %2225, %v386_v10   ;;  %2206 = vmatpush.bf16.msra.mxu2 %v2136_v32  ;;  %v323_v10 = vld [vmem:[%s2383_s22] sm:$0xff] }
  0x26   : > { %433 = vperm.xlu0 %2224, %v390_v11   ;;  %453 = vperm.xlu2 %2226, %v394_v12   ;;  %v2163_v11 = vld [vmem:[%s2795_s1 + $0x130] sm:$0xff]  ;;  %v328_v12 = vld [vmem:[%s2383_s22 + $0x28] sm:$0xff] }
  0x27   : > { %601 = vmatpush.bf16.msra.mxu0 %v2136_v32  ;;  %2205 = vmatpush.bf16.msra.mxu1 %v2136_v32 }
  0x28   : > { %919 = vmatpush.bf16.msra.mxu3 %v2152_v61  ;;  %v343_v61 = vmul.f32 %v2389_v28, %v326_v56  ;;  %v2186_v56 = vld [vmem:[%s2795_s1 + $0x1e8] sm:$0xff] }
  0x29   : > { %2208 = vmatpush.bf16.msra.mxu2 %v2135_v35 }
  0x2b   : > { %602 = vmatpush.bf16.msra.mxu0 %v2135_v35  ;;  %2207 = vmatpush.bf16.msra.mxu1 %v2135_v35  ;;  %v332_v35 = vld [vmem:[%s2383_s22 + $0x48] sm:$0xff] }
  0x2c   : > { %920 = vmatpush.bf16.msra.mxu3 %v2151_v6  ;;  %v2157_v6 = vld [vmem:[%s2795_s1 + $0x100] sm:$0xff] }
  0x2d   : > { %1600 = vperm.xlu1 %2225, %v1588_v13   ;;  %2210 = vmatpush.bf16.msra.mxu2 %v2134_v39  ;;  %v376_v13 = vmax.f32 %v363_v3, 0.0 }
  0x2e   : > { %458 = vperm.xlu0 %2224, %v395_v14   ;;  %1605 = vperm.xlu2 %2226, %v1589_v15   ;;  %v340_v14 = vmul.f32 %v2389_v28, %v323_v10  ;;  %v2130_v15 = vld [vmem:[%s2795_s1 + $0x28] sm:$0xff]  ;;  %v364_v10 = vadd.f32 %v2398_v31, %v347_v0  ;;  %v2169_v0 = vld [vmem:[%s2795_s1 + $0x160] sm:$0xff] }
  0x2f   : > { %603 = vmatpush.bf16.msra.mxu0 %v2134_v39  ;;  %2209 = vmatpush.bf16.msra.mxu1 %v2134_v39  ;;  %v349_v39 = vmul.f32 %v2389_v28, %v332_v35 }
  0x30   : > { %v357_v26 = vadd.f32 %v2398_v31, %v340_v14 }
  0x31   : > { %2212 = vmatpush.bf16.msra.mxu2 %v2133_v45  ;;  %v366_v49 = vadd.f32 %v2398_v31, %v349_v39 }
  0x32   : > { %v370_v38 = vmax.f32 %v357_v26, 0.0  ;;  %v2196_v26 = vld [vmem:[%s2795_s1 + $0x238] sm:$0xff] }
  0x33   : > { %604 = vmatpush.bf16.msra.mxu0 %v2133_v45  ;;  %2211 = vmatpush.bf16.msra.mxu1 %v2133_v45 }
  0x35   : > { %1615 = vperm.xlu1 %2225, %v1591_v16   ;;  %792 = vmatpush.bf16.msrb.mxu2 %v2148_v46  ;;  %v2144_v16 = vld [vmem:[%s2795_s1 + $0x98] sm:$0xff] }
  0x36   : > { %1610 = vperm.xlu0 %2224, %v1590_v17   ;;  %1620 = vperm.xlu2 %2226, %v1592_v18   ;;  %v2150_v17 = vld [vmem:[%s2795_s1 + $0xc8] sm:$0xff]  ;;  %v374_v18 = vmax.f32 %v361_v8, 0.0 }
  0x37   : > { %679 = vmatpush.bf16.msrb.mxu1 %v2132_v59  ;;  %1038 = vmatpush.bf16.msrb.mxu0 %v2164_v1 }
  0x38   : > { %921 = vmatpush.bf16.msra.mxu3 %v2150_v17 }
  0x39   : > { %793 = vmatpush.bf16.msrb.mxu2 %v2147_v51  ;;  %v2141_v51 = vld [vmem:[%s2795_s1 + $0x80] sm:$0xff] }
  0x3b   : > { %680 = vmatpush.bf16.msrb.mxu1 %v2131_v4  ;;  %1039 = vmatpush.bf16.msrb.mxu0 %v2163_v11  ;;  %v360_v4 = vadd.f32 %v2398_v31, %v343_v61  ;;  %v2188_v11 = vld [vmem:[%s2795_s1 + $0x1f8] sm:$0xff]  ;;  %v2177_v61 = vld [vmem:[%s2795_s1 + $0x1a0] sm:$0xff] }
  0x3c   : > { %922 = vmatpush.bf16.msra.mxu3 %v2149_v30 }
  0x3d   : > { %1630 = vperm.xlu1 %2225, %v1594_v19   ;;  %794 = vmatpush.bf16.msrb.mxu2 %v2146_v60  ;;  %v381_v19 = vmax.f32 %v368_v9, 0.0  ;;  %v379_v60 = vmax.f32 %v366_v49, 0.0 }
  0x3e   : > { %1625 = vperm.xlu0 %2224, %v1593_v20   ;;  %1635 = vperm.xlu2 %2226, %v1595_v21   ;;  %v345_v20 = vmul.f32 %v2389_v28, %v328_v12  ;;  %v2162_v21 = vld [vmem:[%s2795_s1 + $0x128] sm:$0xff] }
  0x3f   : > { %681 = vmatpush.bf16.msrb.mxu1 %v2130_v15  ;;  %1040 = vmatpush.bf16.msrb.mxu0 %v2162_v21  ;;  %v335_v15 = vld [vmem:[%s2383_s22 + $0x60] sm:$0xff]  ;;  %v2172_v21 = vld [vmem:[%s2795_s1 + $0x178] sm:$0xff] }
  0x40   : > { %v362_v34 = vadd.f32 %v2398_v31, %v345_v20  ;;  %1407 = vmatpush.bf16.msrb.mxu3 %v2188_v11  ;;  %v352_v20 = vmul.f32 %v2389_v28, %v335_v15  ;;  %v2193_v11 = vld [vmem:[%s2795_s1 + $0x220] sm:$0xff] }
  0x41   : > { %795 = vmatpush.bf16.msrb.mxu2 %v2145_v5  ;;  %v2125_v5 = vld [vmem:[%s2795_s1] sm:$0xff] }
  0x42   : > { %v375_v44 = vmax.f32 %v362_v34, 0.0  ;;  %v369_v30 = vadd.f32 %v2398_v31, %v352_v20 }
  0x43   : > { %682 = vmatpush.bf16.msrb.mxu1 %v2129_v27  ;;  %1041 = vmatpush.bf16.msrb.mxu0 %v2161_v36 }
  0x44   : > { %v382_v36 = vmax.f32 %v369_v30, 0.0  ;;  %v2174_v30 = vld [vmem:[%s2795_s1 + $0x188] sm:$0xff] }
  0x45   : > { %1645 = vperm.xlu1 %2225, %v1597_v22   ;;  %796 = vmatpush.bf16.msrb.mxu2 %v2144_v16 }
  0x46   : > { %1640 = vperm.xlu0 %2224, %v1596_v23  }
  0x47   : > { %1042 = vmatpush.bf16.msrb.mxu0 %v2160_v43 }
  0x49   : > { %797 = vmatpush.bf16.msrb.mxu2 %v2143_v29 }
  0x4b   : > { %1043 = vmatpush.bf16.msrb.mxu0 %v2159_v52  ;;  %v2178_v52 = vld [vmem:[%s2795_s1 + $0x1a8] sm:$0xff] }
  0x4d   : > { %798 = vmatpush.bf16.msrb.mxu2 %v2142_v41 }
  0x51   : > { %799 = vmatpush.bf16.msrb.mxu2 %v2141_v51 }
  0x68   : > { %v404_v40 = vpop.permute.xlu2 %403 }
  0x69   : > { %v2418_v42 = vmul.f32 %v404_v40, %v371_v37  ;;  %v331_v37 = vld [vmem:[%s2383_s22 + $0x40] sm:$0xff]  ;;  %v2128_v40 = vld [vmem:[%s2795_s1 + $0x18] sm:$0xff] }
  0x6a   : > { %v348_v45 = vmul.f32 %v2389_v28, %v331_v37  ;;  %683 = vmatpush.bf16.msrb.mxu1 %v2128_v40  ;;  %v2171_v37 = vld [vmem:[%s2795_s1 + $0x170] sm:$0xff] }
  0x6b   : > { %475 = vst [vmem:[#allocation2 + $0x8] sm:$0xff] %v2418_v42 }
  0x6c   : > { %v365_v55 = vadd.f32 %v2398_v31, %v348_v45  ;;  %v2187_v31 = vld [vmem:[%s2795_s1 + $0x1f0] sm:$0xff] }
  0x6d   : > { %1408 = vmatpush.bf16.msrb.mxu3 %v2187_v31 }
  0x6e   : > { %v378_v63 = vmax.f32 %v365_v55, 0.0  ;;  %v2195_v55 = vld [vmem:[%s2795_s1 + $0x230] sm:$0xff] }
  0x70   : > { %v409_v50 = vpop.permute.xlu2 %408 }
  0x71   : > { %v2439_v53 = vmul.f32 %v409_v50, %v372_v48  ;;  %v2127_v50 = vld [vmem:[%s2795_s1 + $0x10] sm:$0xff]  ;;  %1409 = vmatpush.bf16.msrb.mxu3 %v2186_v56 }
  0x72   : > { %684 = vmatpush.bf16.msrb.mxu1 %v2127_v50 }
  0x73   : > { %476 = vst [vmem:[#allocation2 + $0x10] sm:$0xff] %v2439_v53 }
  0x76   : > { %685 = vmatpush.bf16.msrb.mxu1 %v2126_v58 }
  0x78   : > { %v449_v2 = vpop.permute.xlu2 %448 }
  0x79   : > { %v471_v7 = vmul.f32 %v449_v2, %v380_v62  ;;  %v2158_v62 = vld [vmem:[%s2795_s1 + $0x108] sm:$0xff] }
  0x7a   : > { %1044 = vmatpush.bf16.msrb.mxu0 %v2158_v62  ;;  %v519_v9 = vld [vmem:[#allocation2 + $0x9] sm:$0xff]  ;;  %686 = vmatpush.bf16.msrb.mxu1 %v2125_v5 }
  0x7b   : > { %484 = vst [vmem:[#allocation2 + $0x50] sm:$0xff] %v471_v7  ;;  %v836_v40 = vld [vmem:[#allocation2 + $0xa] sm:$0xff] }
  0x7c   : > { %v2194_v62 = vld [vmem:[%s2795_s1 + $0x228] sm:$0xff] }
  0x7d   : > { %v959_v5 = vld [vmem:[#allocation2 + $0xb] sm:$0xff] }
  0x7e   : > { %1045 = vmatpush.bf16.msrb.mxu0 %v2157_v6 }
  0x7f   : > { %v429_v22 = vpop.permute.xlu1 %428 }
  0x80   : > { %v2492_v23 = vmul.f32 %v429_v22, %v376_v13  ;;  %v419_v24 = vpop.permute.xlu0 %418  ;;  %v454_v25 = vpop.permute.xlu2 %453 }
  0x81   : > { %v2504_v32 = vmul.f32 %v419_v24, %v374_v18  ;;  %v472_v33 = vmul.f32 %v454_v25, %v381_v19  ;;  %v373_v18 = vmax.f32 %v360_v4, 0.0  ;;  %v377_v19 = vmax.f32 %v364_v10, 0.0  ;;  %v2176_v10 = vld [vmem:[%s2795_s1 + $0x198] sm:$0xff] }
  0x82   : > { %480 = vst [vmem:[#allocation2 + $0x30] sm:$0xff] %v2492_v23 }
  0x83   : > { %478 = vst [vmem:[#allocation2 + $0x20] sm:$0xff] %v2504_v32 }
  0x84   : > { %485 = vst [vmem:[#allocation2 + $0x58] sm:$0xff] %v472_v33  ;;  %v2180_v33 = vld [vmem:[%s2795_s1 + $0x1b8] sm:$0xff] }
  0x87   : > { %v399_v46 = vpop.permute.xlu1 %398 }
  0x88   : > { %v424_v47 = vpop.permute.xlu0 %423  ;;  %v2525_v48 = vmul.f32 %v399_v46, %v370_v38  ;;  %v2179_v38 = vld [vmem:[%s2795_s1 + $0x1b0] sm:$0xff] }
  0x89   : > { %v2537_v54 = vmul.f32 %v424_v47, %v375_v44 }
  0x8a   : > { %474 = vst [vmem:[#allocation2] sm:$0xff] %v2525_v48 }
  0x8b   : > { %479 = vst [vmem:[#allocation2 + $0x28] sm:$0xff] %v2537_v54  ;;  %v499_v59 = vpack.c.bf16 %v2537_v54, %v2504_v32  ;;  %v2189_v32 = vld [vmem:[%s2795_s1 + $0x200] sm:$0xff]  ;;  %v968_v56 = vld [vmem:[#allocation2 + $0x53] sm:$0xff] }
  0x8f   : > { %v444_v1 = vpop.permute.xlu1 %443 }
  0x90   : > { %v439_v2 = vpop.permute.xlu0 %438  ;;  %v2554_v3 = vmul.f32 %v444_v1, %v379_v60 }
  0x91   : > { %v2563_v7 = vmul.f32 %v439_v2, %v378_v63  ;;  %v518_v8 = vld [vmem:[#allocation2 + $0x1] sm:$0xff] }
  0x92   : > { %483 = vst [vmem:[#allocation2 + $0x48] sm:$0xff] %v2554_v3  ;;  %v528_v12 = vpack.c.bf16 %v519_v9, %v518_v8  ;;  %v522_v13 = vld [vmem:[#allocation2 + $0x21] sm:$0xff]  ;;  %v523_v14 = vld [vmem:[#allocation2 + $0x29] sm:$0xff]  ;;  %v497_v9 = vpack.c.bf16 %v2418_v42, %v2525_v48  ;;  %v2168_v42 = vld [vmem:[%s2795_s1 + $0x158] sm:$0xff] }
  0x93   : > { %482 = vst [vmem:[#allocation2 + $0x40] sm:$0xff] %v2563_v7  ;;  %v530_v16 = vpack.c.bf16 %v523_v14, %v522_v13  ;;  %v501_v17 = vpack.c.bf16 %v2554_v3, %v2563_v7  ;;  %v713_v58 = vld [vmem:[#allocation2 + $0x2] sm:$0xff]  ;;  %v2175_v48 = vld [vmem:[%s2795_s1 + $0x190] sm:$0xff]  ;;  %v2192_v14 = vld [vmem:[%s2795_s1 + $0x218] sm:$0xff] }
  0x94   : > { %605 = vmatmul.bf16.vlgmr.msra.gmra.mxu0 %v528_v12  ;;  %v723_v60 = vpack.c.bf16 %v836_v40, %v713_v58  ;;  %v2185_v63 = vld [vmem:[%s2795_s1 + $0x1e0] sm:$0xff]  ;;  %v2184_v12 = vld [vmem:[%s2795_s1 + $0x1d8] sm:$0xff]  ;;  %v963_v31 = vld [vmem:[#allocation2 + $0x2b] sm:$0xff] }
  0x95   : > { %615 = vmatmul.bf16.vlgmr.msra.gmra.mxu1 %v530_v16  ;;  %1530 = vmatpush.bf16.msra.mxu0 %v2196_v26  ;;  %v839_v4 = vld [vmem:[#allocation2 + $0x22] sm:$0xff]  ;;  %v2167_v26 = vld [vmem:[%s2795_s1 + $0x150] sm:$0xff] }
  0x96   : > { %1161 = vmatpush.bf16.msra.mxu1 %v2172_v21  ;;  %1410 = vmatpush.bf16.msrb.mxu3 %v2185_v63  ;;  %v1453_v3 = vld [vmem:[#allocation2 + $0x26] sm:$0xff] }
  0x97   : > { %v414_v22 = vpop.permute.xlu1 %413 }
  0x98   : > { %v434_v24 = vpop.permute.xlu0 %433  ;;  %v2578_v25 = vmul.f32 %v414_v22, %v373_v18  ;;  %v840_v18 = vld [vmem:[#allocation2 + $0x2a] sm:$0xff] }
  0x99   : > { %v2583_v27 = vmul.f32 %v434_v24, %v377_v19  ;;  %v527_v29 = vld [vmem:[#allocation2 + $0x49] sm:$0xff]  ;;  %1531 = vmatpush.bf16.msra.mxu0 %v2195_v55 }
  0x9a   : > { %477 = vst [vmem:[#allocation2 + $0x18] sm:$0xff] %v2578_v25  ;;  %v526_v28 = vld [vmem:[#allocation2 + $0x41] sm:$0xff]  ;;  %1162 = vmatpush.bf16.msra.mxu1 %v2171_v37  ;;  %1411 = vmatpush.bf16.msrb.mxu3 %v2184_v12  ;;  %v498_v22 = vpack.c.bf16 %v2578_v25, %v2439_v53  ;;  %v2183_v24 = vld [vmem:[%s2795_s1 + $0x1d0] sm:$0xff] }
  0x9b   : > { %481 = vst [vmem:[#allocation2 + $0x38] sm:$0xff] %v2583_v27  ;;  %v532_v34 = vpack.c.bf16 %v527_v29, %v526_v28  ;;  %v500_v35 = vpack.c.bf16 %v2583_v27, %v2492_v23  ;;  %v962_v19 = vld [vmem:[#allocation2 + $0x23] sm:$0xff]  ;;  %v725_v29 = vpack.c.bf16 %v840_v18, %v839_v4  ;;  %v2191_v53 = vld [vmem:[%s2795_s1 + $0x210] sm:$0xff] }
  0x9c   : > { %v2182_v25 = vld [vmem:[%s2795_s1 + $0x1c8] sm:$0xff]  ;;  %v2181_v37 = vld [vmem:[%s2795_s1 + $0x1c0] sm:$0xff] }
  0x9d   : > { %625 = vmatmul.bf16.vlgmr.msra.gmra.mxu2 %v532_v34  ;;  %1532 = vmatpush.bf16.msra.mxu0 %v2194_v62  ;;  %v2166_v28 = vld [vmem:[%s2795_s1 + $0x148] sm:$0xff] }
  0x9e   : > { %1284 = vmatpush.bf16.msra.mxu2 %v2180_v33  ;;  %1163 = vmatpush.bf16.msra.mxu1 %v2170_v57  ;;  %v844_v54 = vld [vmem:[#allocation2 + $0x4a] sm:$0xff] }
  0x9f   : > { %1412 = vmatpush.bf16.msrb.mxu3 %v2183_v24  ;;  %v1330_v23 = vld [vmem:[#allocation2 + $0x25] sm:$0xff]  ;;  %v1331_v27 = vld [vmem:[#allocation2 + $0x2d] sm:$0xff] }
  0xa0   : > { %v459_v39 = vpop.permute.xlu0 %458 }
  0xa1   : > { %v473_v41 = vmul.f32 %v459_v39, %v382_v36  ;;  %v520_v43 = vld [vmem:[#allocation2 + $0x11] sm:$0xff]  ;;  %v521_v44 = vld [vmem:[#allocation2 + $0x19] sm:$0xff]  ;;  %1533 = vmatpush.bf16.msra.mxu0 %v2193_v11  ;;  %v843_v36 = vld [vmem:[#allocation2 + $0x42] sm:$0xff] }
  0xa2   : > { %v837_v45 = vld [vmem:[#allocation2 + $0x12] sm:$0xff]  ;;  %v529_v46 = vpack.c.bf16 %v521_v44, %v520_v43  ;;  %1285 = vmatpush.bf16.msra.mxu2 %v2179_v38  ;;  %v838_v1 = vld [vmem:[#allocation2 + $0x1a] sm:$0xff]  ;;  %1164 = vmatpush.bf16.msra.mxu1 %v2169_v0 }
  0xa3   : > { %v524_v47 = vld [vmem:[#allocation2 + $0x31] sm:$0xff]  ;;  %v525_v49 = vld [vmem:[#allocation2 + $0x39] sm:$0xff]  ;;  %v846_v50 = vpack.c.bf16 %v837_v45, %v836_v40  ;;  %486 = vst [vmem:[#allocation2 + $0x60] sm:$0xff] %v473_v41  ;;  %v847_v6 = vpack.c.bf16 %v839_v4, %v838_v1  ;;  %v724_v13 = vpack.c.bf16 %v838_v1, %v837_v45  ;;  %1413 = vmatpush.bf16.msrb.mxu3 %v2182_v25  ;;  %v2190_v41 = vld [vmem:[%s2795_s1 + $0x208] sm:$0xff] }
  0xa4   : > { %v531_v51 = vpack.c.bf16 %v525_v49, %v524_v47  ;;  %610 = vmatmul.bf16.gmra.mxu0 %v529_v46  ;;  %v960_v2 = vld [vmem:[#allocation2 + $0x13] sm:$0xff]  ;;  %v961_v16 = vld [vmem:[#allocation2 + $0x1b] sm:$0xff]  ;;  %v966_v46 = vld [vmem:[#allocation2 + $0x43] sm:$0xff]  ;;  %v1339_v1 = vpack.c.bf16 %v1331_v27, %v1330_v23 }
  0xa5   : > { %923 = vmatmul.bf16.vlgmr.msra.gmra.mxu3 %v846_v50  ;;  %v969_v8 = vpack.c.bf16 %v960_v2, %v959_v5  ;;  %v841_v15 = vld [vmem:[#allocation2 + $0x32] sm:$0xff]  ;;  %1534 = vmatpush.bf16.msra.mxu0 %v2192_v14  ;;  %v970_v21 = vpack.c.bf16 %v962_v19, %v961_v16  ;;  %v842_v33 = vld [vmem:[#allocation2 + $0x3a] sm:$0xff]  ;;  %v727_v50 = vpack.c.bf16 %v844_v54, %v843_v36  ;;  %v1207_v5 = vld [vmem:[#allocation2 + $0x24] sm:$0xff] }
  0xa6   : > { %620 = vmatmul.bf16.gmra.mxu1 %v531_v51  ;;  %1286 = vmatpush.bf16.msra.mxu2 %v2178_v52  ;;  %v848_v20 = vpack.c.bf16 %v841_v15, %v840_v18  ;;  %v964_v34 = vld [vmem:[#allocation2 + $0x33] sm:$0xff]  ;;  %v849_v38 = vpack.c.bf16 %v843_v36, %v842_v33  ;;  %v2173_v40 = vld [vmem:[%s2795_s1 + $0x180] sm:$0xff]  ;;  %v726_v44 = vpack.c.bf16 %v842_v33, %v841_v15  ;;  %v967_v51 = vld [vmem:[#allocation2 + $0x4b] sm:$0xff] }
  0xa7   : > { %1165 = vmatpush.bf16.msra.mxu1 %v2168_v42  ;;  %v971_v39 = vpack.c.bf16 %v964_v34, %v963_v31  ;;  %1414 = vmatpush.bf16.msrb.mxu3 %v2181_v37  ;;  %v2165_v43 = vld [vmem:[%s2795_s1 + $0x140] sm:$0xff]  ;;  %v845_v45 = vld [vmem:[#allocation2 + $0x52] sm:$0xff]  ;;  %v973_v57 = vpack.c.bf16 %v968_v56, %v967_v51 }
  0xa8   : > { %v850_v47 = vpack.c.bf16 %v845_v45, %v844_v54  ;;  %v1328_v52 = vld [vmem:[#allocation2 + $0x15] sm:$0xff]  ;;  %v1329_v55 = vld [vmem:[#allocation2 + $0x1d] sm:$0xff]  ;;  %v1082_v0 = vld [vmem:[#allocation2 + $0xc] sm:$0xff] }
  0xa9   : > { %1535 = vmatpush.bf16.msra.mxu0 %v2191_v53  ;;  %v1338_v58 = vpack.c.bf16 %v1329_v55, %v1328_v52  ;;  %v1452_v63 = vld [vmem:[#allocation2 + $0x1e] sm:$0xff]  ;;  %v1332_v7 = vld [vmem:[#allocation2 + $0x35] sm:$0xff]  ;;  %v1212_v36 = vld [vmem:[#allocation2 + $0x4c] sm:$0xff] }
  0xaa   : > { %1287 = vmatpush.bf16.msra.mxu2 %v2177_v61  ;;  %v1206_v61 = vld [vmem:[#allocation2 + $0x1c] sm:$0xff]  ;;  %v1334_v19 = vld [vmem:[#allocation2 + $0x45] sm:$0xff] }
  0xab   : > { %1166 = vmatpush.bf16.msra.mxu1 %v2167_v26  ;;  %v1093_v42 = vpack.c.bf16 %v1207_v5, %v1206_v61  ;;  %v1210_v14 = vld [vmem:[#allocation2 + $0x3c] sm:$0xff]  ;;  %v1211_v34 = vld [vmem:[#allocation2 + $0x44] sm:$0xff] }
  0xac   : > { %v1336_v54 = vld [vmem:[#allocation2 + $0x55] sm:$0xff] }
  0xad   : > { %800 = vmatmul.bf16.vlgmr.msrb.gmra.mxu2 %v723_v60  ;;  %1536 = vmatpush.bf16.msra.mxu0 %v2190_v41  ;;  %v1205_v60 = vld [vmem:[#allocation2 + $0x14] sm:$0xff]  ;;  %v1457_v41 = vld [vmem:[#allocation2 + $0x46] sm:$0xff]  ;;  %v1214_v56 = vld [vmem:[#allocation2 + $0x5c] sm:$0xff] }
  0xae   : > { %1288 = vmatpush.bf16.msra.mxu2 %v2176_v10  ;;  %v1215_v62 = vpack.c.bf16 %v1206_v61, %v1205_v60  ;;  %v1092_v4 = vpack.c.bf16 %v1205_v60, %v1082_v0  ;;  %v1213_v61 = vld [vmem:[#allocation2 + $0x54] sm:$0xff]  ;;  %v1460_v0 = vld [vmem:[#allocation2 + $0x5e] sm:$0xff] }
  0xaf   : > { %1167 = vmatpush.bf16.msra.mxu1 %v2166_v28  ;;  %v1219_v23 = vpack.c.bf16 %v1214_v56, %v1213_v61 }
  0xb1   : > { %1537 = vmatpush.bf16.msra.mxu0 %v2189_v32 }
  0xb2   : > { %1289 = vmatpush.bf16.msra.mxu2 %v2175_v48  ;;  %v1209_v48 = vld [vmem:[#allocation2 + $0x34] sm:$0xff] }
  0xb3   : > { %1168 = vmatpush.bf16.msra.mxu1 %v2165_v43  ;;  %v1217_v18 = vpack.c.bf16 %v1210_v14, %v1209_v48  ;;  %v1458_v43 = vld [vmem:[#allocation2 + $0x4e] sm:$0xff] }
  0xb4   : > { %1046 = vmatmul.bf16.vlgmr.msrb.gmra.mxu0 %v969_v8 }
  0xb5   : > { %928 = vmatmul.bf16.gmra.mxu3 %v847_v6  ;;  %v1208_v6 = vld [vmem:[#allocation2 + $0x2c] sm:$0xff] }
  0xb6   : > { %687 = vmatmul.bf16.vlgmr.msrb.gmra.mxu1 %v497_v9  ;;  %1290 = vmatpush.bf16.msra.mxu2 %v2174_v30  ;;  %v1216_v8 = vpack.c.bf16 %v1208_v6, %v1207_v5  ;;  %v1454_v9 = vld [vmem:[#allocation2 + $0x2e] sm:$0xff]  ;;  %v1094_v25 = vpack.c.bf16 %v1209_v48, %v1208_v6  ;;  %v1459_v5 = vld [vmem:[#allocation2 + $0x56] sm:$0xff] }
  0xba   : > { %1291 = vmatpush.bf16.msra.mxu2 %v2173_v40  ;;  %v1337_v40 = vld [vmem:[#allocation2 + $0x5d] sm:$0xff] }
  0xbb   : > { %v1342_v45 = vpack.c.bf16 %v1337_v40, %v1336_v54 }
  0xbd   : > { %805 = vmatmul.bf16.gmra.mxu2 %v724_v13  ;;  %v1462_v13 = vpack.c.bf16 %v1454_v9, %v1453_v3 }
  0xc4   : > { %1051 = vmatmul.bf16.gmra.mxu0 %v970_v21  ;;  %v1455_v21 = vld [vmem:[#allocation2 + $0x36] sm:$0xff] }
  0xc5   : > { %933 = vmatmul.bf16.gmra.mxu3 %v848_v20  ;;  %v1335_v20 = vld [vmem:[#allocation2 + $0x4d] sm:$0xff] }
  0xc6   : > { %692 = vmatmul.bf16.gmra.mxu1 %v498_v22  ;;  %v1456_v22 = vld [vmem:[#allocation2 + $0x3e] sm:$0xff]  ;;  %v1341_v30 = vpack.c.bf16 %v1335_v20, %v1334_v19 }
  0xc7   : > { %v1463_v53 = vpack.c.bf16 %v1456_v22, %v1455_v21 }
  0xcd   : > { %810 = vmatmul.bf16.gmra.mxu2 %v725_v29 }
  0xd4   : > { %1056 = vmatmul.bf16.gmra.mxu0 %v971_v39 }
  0xd5   : > { %938 = vmatmul.bf16.gmra.mxu3 %v849_v38  ;;  %v1218_v38 = vpack.c.bf16 %v1212_v36, %v1211_v34 }
  0xd6   : > { %697 = vmatmul.bf16.gmra.mxu1 %v499_v59  ;;  %v965_v59 = vld [vmem:[#allocation2 + $0x3b] sm:$0xff] }
  0xd7   : > { %v972_v49 = vpack.c.bf16 %v966_v46, %v965_v59  ;;  %v1464_v46 = vpack.c.bf16 %v1458_v43, %v1457_v41 }
  0xdd   : > { %815 = vmatmul.bf16.gmra.mxu2 %v726_v44 }
  0xe4   : > { %1061 = vmatmul.bf16.gmra.mxu0 %v972_v49  ;;  %v1095_v49 = vpack.c.bf16 %v1211_v34, %v1210_v14 }
  0xe5   : > { %943 = vmatmul.bf16.gmra.mxu3 %v850_v47 }
  0xe6   : > { %702 = vmatmul.bf16.gmra.mxu1 %v500_v35  ;;  %v1451_v35 = vld [vmem:[#allocation2 + $0x16] sm:$0xff] }
  0xe7   : > { %v1461_v2 = vpack.c.bf16 %v1452_v63, %v1451_v35 }
  0xed   : > { %820 = vmatmul.bf16.gmra.mxu2 %v727_v50 }
  0xf4   : > { %1066 = vmatmul.bf16.gmra.mxu0 %v973_v57 }
  0xf5   : > { %1415 = vmatmul.bf16.vlgmr.msrb.gmra.mxu3 %v1338_v58 }
  0xf6   : > { %707 = vmatmul.bf16.gmra.mxu1 %v501_v17  ;;  %v1333_v17 = vld [vmem:[#allocation2 + $0x3d] sm:$0xff] }
  0xf7   : > { %v1340_v12 = vpack.c.bf16 %v1333_v17, %v1332_v7  ;;  %v1096_v7 = vpack.c.bf16 %v1213_v61, %v1212_v36 }
  0xfd   : > { %1292 = vmatmul.bf16.vlgmr.msra.gmra.mxu2 %v1215_v62 }
 0x104   : > { %1538 = vmatmul.bf16.vlgmr.msra.gmra.mxu0 %v1461_v2 }
 0x105   : > { %1420 = vmatmul.bf16.gmra.mxu3 %v1339_v1 }
 0x106   : > { %1169 = vmatmul.bf16.vlgmr.msra.gmra.mxu1 %v1092_v4 }
 0x10d   : > { %1297 = vmatmul.bf16.gmra.mxu2 %v1216_v8  ;;  %v1465_v8 = vpack.c.bf16 %v1460_v0, %v1459_v5 }
 0x111   : > { %v606_v10 = vpop.f32.mrf.mxu0 }
 0x112   : > { %v2690_v11 = vpop.f32.mrf.mxu1 }
 0x114   : > { %1543 = vmatmul.bf16.gmra.mxu0 %v1462_v13 }
 0x115   : > { %1425 = vmatmul.bf16.gmra.mxu3 %v1340_v12 }
 0x116   : > { %1174 = vmatmul.bf16.gmra.mxu1 %v1093_v42 }
 0x119   : > { %v608_v15 = vpop.f32.mrf.mxu0 }
 0x11a   : > { %v2692_v16 = vpop.f32.mrf.mxu1 }
 0x11d   : > { %1302 = vmatmul.bf16.gmra.mxu2 %v1217_v18 }
 0x120   : > { %v2694_v24 = vpop.f32.mrf.mxu2 }
 0x121   : > { %v611_v26 = vpop.f32.mrf.mxu0 }
 0x123   : > { %v2696_v29 = vpop.f32.mrf.mxu1 }
 0x124   : > { %1548 = vmatmul.bf16.gmra.mxu0 %v1463_v53 }
 0x125   : > { %1430 = vmatmul.bf16.gmra.mxu3 %v1341_v30 }
 0x126   : > { %1179 = vmatmul.bf16.gmra.mxu1 %v1094_v25 }
 0x128   : > { %v924_v28 = vpop.f32.mrf.mxu3  ;;  %v2698_v33 = vpop.f32.mrf.mxu2 }
 0x129   : > { %v613_v31 = vpop.f32.mrf.mxu0 }
 0x12b   : > { %v2700_v37 = vpop.f32.mrf.mxu1 }
 0x12d   : > { %1307 = vmatmul.bf16.gmra.mxu2 %v1218_v38 }
 0x130   : > { %v926_v39 = vpop.f32.mrf.mxu3  ;;  %v801_v44 = vpop.f32.mrf.mxu2 }
 0x131   : > { %v1047_v32 = vpop.f32.mrf.mxu0 }
 0x133   : > { %v688_v59 = vpop.f32.mrf.mxu1 }
 0x134   : > { %v689_v47 = vadd.f32 %v688_v59, %v606_v10  ;;  %1553 = vmatmul.bf16.gmra.mxu0 %v1464_v46 }
 0x135   : > { %1435 = vmatmul.bf16.gmra.mxu3 %v1342_v45 }
 0x136   : > { %v826_v50 = vadd.f32 %v801_v44, %v689_v47  ;;  %1184 = vmatmul.bf16.gmra.mxu1 %v1095_v49 }
 0x138   : > { %v949_v51 = vadd.f32 %v924_v28, %v826_v50  ;;  %v929_v52 = vpop.f32.mrf.mxu3  ;;  %v803_v55 = vpop.f32.mrf.mxu2 }
 0x139   : > { %v1049_v58 = vpop.f32.mrf.mxu0 }
 0x13a   : > { %v2702_v57 = vadd.f32 %v1047_v32, %v949_v51 }
 0x13b   : > { %v690_v60 = vpop.f32.mrf.mxu1 }
 0x13c   : > { %v691_v62 = vadd.f32 %v690_v60, %v608_v15  ;;  %v2239_v60 = vmov 0.0  }
 0x13d   : > { %1312 = vmatmul.bf16.gmra.mxu2 %v1219_v23  ;;  %1700 = vst [vmem:[%s2725_s18] sm:$0xff] %v2239_v60 }
 0x13e   : > { %v827_v27 = vadd.f32 %v803_v55, %v691_v62  ;;  %1701 = vst [vmem:[%s2725_s18 + $0x8] sm:$0xff] %v2239_v60 }
 0x13f   : > { %1702 = vst [vmem:[%s2725_s18 + $0x10] sm:$0xff] %v2239_v60 }
 0x140   : > { %v950_v35 = vadd.f32 %v926_v39, %v827_v27  ;;  %v931_v63 = vpop.f32.mrf.mxu3  ;;  %v806_v1 = vpop.f32.mrf.mxu2  ;;  %1712 = vst [vmem:[%s2725_s18 + $0x60] sm:$0xff] %v2239_v60 }
 0x141   : > { %v1052_v4 = vpop.f32.mrf.mxu0  ;;  %1703 = vst [vmem:[%s2725_s18 + $0x18] sm:$0xff] %v2239_v60 }
 0x142   : > { %v2704_v2 = vadd.f32 %v1049_v58, %v950_v35  ;;  %1704 = vst [vmem:[%s2725_s18 + $0x20] sm:$0xff] %v2239_v60 }
 0x143   : > { %v693_v6 = vpop.f32.mrf.mxu1  ;;  %1705 = vst [vmem:[%s2725_s18 + $0x28] sm:$0xff] %v2239_v60 }
 0x144   : > { %v694_v3 = vadd.f32 %v693_v6, %v611_v26  ;;  %1558 = vmatmul.bf16.gmra.mxu0 %v1465_v8  ;;  %1706 = vst [vmem:[%s2725_s18 + $0x30] sm:$0xff] %v2239_v60 }
 0x145   : > { %1707 = vst [vmem:[%s2725_s18 + $0x38] sm:$0xff] %v2239_v60 }
 0x146   : > { %v828_v17 = vadd.f32 %v806_v1, %v694_v3  ;;  %1189 = vmatmul.bf16.gmra.mxu1 %v1096_v7  ;;  %1708 = vst [vmem:[%s2725_s18 + $0x40] sm:$0xff] %v2239_v60 }
 0x147   : > { %1709 = vst [vmem:[%s2725_s18 + $0x48] sm:$0xff] %v2239_v60 }
 0x148   : > { %v951_v9 = vadd.f32 %v929_v52, %v828_v17  ;;  %v934_v10 = vpop.f32.mrf.mxu3  ;;  %v808_v12 = vpop.f32.mrf.mxu2  ;;  %1710 = vst [vmem:[%s2725_s18 + $0x50] sm:$0xff] %v2239_v60 }
 0x149   : > { %v1054_v42 = vpop.f32.mrf.mxu0  ;;  %1711 = vst [vmem:[%s2725_s18 + $0x58] sm:$0xff] %v2239_v60 }
 0x14a   : > { %v2706_v13 = vadd.f32 %v1052_v4, %v951_v9 }
 0x14b   : > { %v695_v48 = vpop.f32.mrf.mxu1 }
 0x14c   : > { %v696_v14 = vadd.f32 %v695_v48, %v613_v31 }
 0x14e   : > { %v829_v15 = vadd.f32 %v808_v12, %v696_v14  ;;  %v2752_v14 = vld [vmem:[%s2796_s2] ss:$0 sm:$0xff] }
 0x150   : > { %v952_v18 = vadd.f32 %v931_v63, %v829_v15  ;;  %v936_v19 = vpop.f32.mrf.mxu3  ;;  %v811_v20 = vpop.f32.mrf.mxu2 }
 0x151   : > { %v1057_v22 = vpop.f32.mrf.mxu0 }
 0x152   : > { %v2708_v21 = vadd.f32 %v1054_v42, %v952_v18 }
 0x153   : > { %v698_v26 = vpop.f32.mrf.mxu1 }
 0x154   : > { %v699_v30 = vadd.f32 %v698_v26, %v2690_v11 }
 0x156   : > { %v830_v53 = vadd.f32 %v811_v20, %v699_v30  ;;  %v1601_v30 = vpop.permute.xlu1 %1600 }
 0x158   : > { %v953_v25 = vadd.f32 %v934_v10, %v830_v53  ;;  %v939_v28 = vpop.f32.mrf.mxu3  ;;  %v813_v34 = vpop.f32.mrf.mxu2 }
 0x159   : > { %v1059_v38 = vpop.f32.mrf.mxu0 }
 0x15a   : > { %v2711_v36 = vadd.f32 %v1057_v22, %v953_v25 }
 0x15b   : > { %v700_v39 = vpop.f32.mrf.mxu1 }
 0x15c   : > { %v701_v31 = vadd.f32 %v700_v39, %v2692_v16 }
 0x15e   : > { %v831_v40 = vadd.f32 %v813_v34, %v701_v31 }
 0x160   : > { %v954_v41 = vadd.f32 %v936_v19, %v831_v40  ;;  %v941_v43 = vpop.f32.mrf.mxu3  ;;  %v816_v44 = vpop.f32.mrf.mxu2 }
 0x161   : > { %v1062_v54 = vpop.f32.mrf.mxu0 }
 0x162   : > { %v2714_v32 = vadd.f32 %v1059_v38, %v954_v41 }
 0x163   : > { %v703_v59 = vpop.f32.mrf.mxu1 }
 0x164   : > { %v704_v11 = vadd.f32 %v703_v59, %v2696_v29 }
 0x166   : > { %v832_v45 = vadd.f32 %v816_v44, %v704_v11 }
 0x168   : > { %v955_v46 = vadd.f32 %v939_v28, %v832_v45  ;;  %v944_v47 = vpop.f32.mrf.mxu3  ;;  %v818_v49 = vpop.f32.mrf.mxu2 }
 0x169   : > { %v1064_v51 = vpop.f32.mrf.mxu0 }
 0x16a   : > { %v2717_v50 = vadd.f32 %v1062_v54, %v955_v46 }
 0x16b   : > { %v705_v52 = vpop.f32.mrf.mxu1 }
 0x16c   : > { %v706_v16 = vadd.f32 %v705_v52, %v2700_v37 }
 0x16e   : > { %v833_v55 = vadd.f32 %v818_v49, %v706_v16 }
 0x170   : > { %v956_v29 = vadd.f32 %v941_v43, %v833_v55  ;;  %v946_v56 = vpop.f32.mrf.mxu3  ;;  %v821_v58 = vpop.f32.mrf.mxu2 }
 0x171   : > { %v1067_v61 = vpop.f32.mrf.mxu0  ;;  %v1606_v43 = vpop.permute.xlu2 %1605 }
 0x172   : > { %v2728_v37 = vadd.f32 %v1064_v51, %v956_v29  ;;  %v1611_v29 = vpop.permute.xlu0 %1610 }
 0x173   : > { %v708_v62 = vpop.f32.mrf.mxu1 }
 0x174   : > { %v709_v23 = vadd.f32 %v708_v62, %v2694_v24 }
 0x176   : > { %v834_v27 = vadd.f32 %v821_v58, %v709_v23 }
 0x178   : > { %v957_v35 = vadd.f32 %v944_v47, %v834_v27  ;;  %v1416_v63 = vpop.f32.mrf.mxu3  ;;  %v823_v0 = vpop.f32.mrf.mxu2 }
 0x179   : > { %v1069_v4 = vpop.f32.mrf.mxu0 }
 0x17a   : > { %v2739_v1 = vadd.f32 %v1067_v61, %v957_v35 }
 0x17b   : > { %v710_v5 = vpop.f32.mrf.mxu1 }
 0x17c   : > { %v711_v24 = vadd.f32 %v710_v5, %v2698_v33 }
 0x17e   : > { %v835_v6 = vadd.f32 %v823_v0, %v711_v24  ;;  %v1616_v24 = vpop.permute.xlu1 %1615 }
 0x180   : > { %v958_v8 = vadd.f32 %v946_v56, %v835_v6  ;;  %v1418_v3 = vpop.f32.mrf.mxu3  ;;  %v1293_v7 = vpop.f32.mrf.mxu2 }
 0x181   : > { %v1539_v9 = vpop.f32.mrf.mxu0 }
 0x182   : > { %v2746_v17 = vadd.f32 %v1069_v4, %v958_v8 }
 0x183   : > { %v1170_v10 = vpop.f32.mrf.mxu1 }
 0x184   : > { %v1195_v12 = vadd.f32 %v1170_v10, %v2702_v57 }
 0x186   : > { %v1318_v42 = vadd.f32 %v1293_v7, %v1195_v12 }
 0x188   : > { %v1441_v48 = vadd.f32 %v1416_v63, %v1318_v42  ;;  %v1295_v33 = vpop.f32.mrf.mxu2  ;;  %v1421_v15 = vpop.f32.mrf.mxu3 }
 0x189   : > { %v1541_v19 = vpop.f32.mrf.mxu0 }
 0x18a   : > { %v1564_v18 = vadd.f32 %v1539_v9, %v1441_v48 }
 0x18b   : > { %v1172_v20 = vpop.f32.mrf.mxu1 }
 0x18c   : > { %v1578_v22 = vadd.f32 %v2752_v14, %v1564_v18  ;;  %v1196_v26 = vadd.f32 %v1172_v20, %v2704_v2 }
 0x18e   : > { %v1648_v53 = vmul.f32 %v1601_v30, %v1578_v22  ;;  %v1319_v25 = vadd.f32 %v1295_v33, %v1196_v26 }
 0x190   : > { %1713 = vst [vmem:[%s2725_s18 + $0xb] sm:$0xff] %v1648_v53  ;;  %v1442_v57 = vadd.f32 %v1418_v3, %v1319_v25  ;;  %v1298_v28 = vpop.f32.mrf.mxu2  ;;  %v1423_v39 = vpop.f32.mrf.mxu3  ;;  %v1674_v59 = vmul.f32 %v1648_v53, %v1648_v53 }
 0x191   : > { %v1544_v38 = vpop.f32.mrf.mxu0 }
 0x192   : > { %v1565_v34 = vadd.f32 %v1541_v19, %v1442_v57  ;;  %v1621_v19 = vpop.permute.xlu2 %1620 }
 0x193   : > { %v1175_v31 = vpop.f32.mrf.mxu1 }
 0x194   : > { %v1579_v40 = vadd.f32 %v2752_v14, %v1565_v34  ;;  %v1197_v41 = vadd.f32 %v1175_v31, %v2706_v13 }
 0x196   : > { %v1649_v44 = vmul.f32 %v1606_v43, %v1579_v40  ;;  %v1320_v54 = vadd.f32 %v1298_v28, %v1197_v41  ;;  %v1626_v40 = vpop.permute.xlu0 %1625 }
 0x198   : > { %v1658_v2 = vadd.f32 %v1649_v44, %v1648_v53  ;;  %v1675_v11 = vmul.f32 %v1649_v44, %v1649_v44  ;;  %1714 = vst [vmem:[%s2725_s18 + $0x13] sm:$0xff] %v1649_v44  ;;  %v1443_v45 = vadd.f32 %v1421_v15, %v1320_v54  ;;  %v1300_v46 = vpop.f32.mrf.mxu2  ;;  %v1426_v13 = vpop.f32.mrf.mxu3 }
 0x199   : > { %v1546_v51 = vpop.f32.mrf.mxu0 }
 0x19a   : > { %v1684_v47 = vadd.f32 %v1675_v11, %v1674_v59  ;;  %v1566_v49 = vadd.f32 %v1544_v38, %v1443_v45 }
 0x19b   : > { %v1177_v52 = vpop.f32.mrf.mxu1 }
 0x19c   : > { %v1580_v16 = vadd.f32 %v2752_v14, %v1566_v49  ;;  %v1198_v55 = vadd.f32 %v1177_v52, %v2708_v21 }
 0x19e   : > { %v1650_v56 = vmul.f32 %v1611_v29, %v1580_v16  ;;  %v1321_v58 = vadd.f32 %v1300_v46, %v1198_v55 }
 0x1a0   : > { %v1659_v60 = vadd.f32 %v1658_v2, %v1650_v56  ;;  %v1676_v61 = vmul.f32 %v1650_v56, %v1650_v56  ;;  %1715 = vst [vmem:[%s2725_s18 + $0x1b] sm:$0xff] %v1650_v56  ;;  %v1444_v62 = vadd.f32 %v1423_v39, %v1321_v58  ;;  %v1303_v23 = vpop.f32.mrf.mxu2  ;;  %v1428_v8 = vpop.f32.mrf.mxu3 }
 0x1a1   : > { %v1549_v63 = vpop.f32.mrf.mxu0 }
 0x1a2   : > { %v1685_v27 = vadd.f32 %v1684_v47, %v1676_v61  ;;  %v1567_v35 = vadd.f32 %v1546_v51, %v1444_v62  ;;  %v1631_v51 = vpop.permute.xlu1 %1630 }
 0x1a3   : > { %v1180_v0 = vpop.f32.mrf.mxu1 }
 0x1a4   : > { %v1581_v4 = vadd.f32 %v2752_v14, %v1567_v35  ;;  %v1199_v5 = vadd.f32 %v1180_v0, %v2711_v36 }
 0x1a6   : > { %v1651_v21 = vmul.f32 %v1616_v24, %v1581_v4  ;;  %v1322_v6 = vadd.f32 %v1303_v23, %v1199_v5 }
 0x1a8   : > { %v1660_v3 = vadd.f32 %v1659_v60, %v1651_v21  ;;  %v1677_v7 = vmul.f32 %v1651_v21, %v1651_v21  ;;  %1716 = vst [vmem:[%s2725_s18 + $0x23] sm:$0xff] %v1651_v21  ;;  %v1445_v9 = vadd.f32 %v1426_v13, %v1322_v6  ;;  %v1305_v10 = vpop.f32.mrf.mxu2  ;;  %v1431_v53 = vpop.f32.mrf.mxu3 }
 0x1a9   : > { %v1551_v48 = vpop.f32.mrf.mxu0 }
 0x1aa   : > { %v1686_v12 = vadd.f32 %v1685_v27, %v1677_v7  ;;  %v1568_v42 = vadd.f32 %v1549_v63, %v1445_v9  ;;  %v1636_v27 = vpop.permute.xlu2 %1635  ;;  %v1641_v9 = vpop.permute.xlu0 %1640 }
 0x1ab   : > { %v1182_v33 = vpop.f32.mrf.mxu1 }
 0x1ac   : > { %v1582_v15 = vadd.f32 %v2752_v14, %v1568_v42  ;;  %v1200_v18 = vadd.f32 %v1182_v33, %v2714_v32 }
 0x1ae   : > { %v1652_v36 = vmul.f32 %v1621_v19, %v1582_v15  ;;  %v1323_v20 = vadd.f32 %v1305_v10, %v1200_v18 }
 0x1b0   : > { %v1661_v22 = vadd.f32 %v1660_v3, %v1652_v36  ;;  %v1678_v26 = vmul.f32 %v1652_v36, %v1652_v36  ;;  %1717 = vst [vmem:[%s2725_s18 + $0x2b] sm:$0xff] %v1652_v36  ;;  %v1446_v30 = vadd.f32 %v1428_v8, %v1323_v20  ;;  %v1308_v25 = vpop.f32.mrf.mxu2  ;;  %v1433_v45 = vpop.f32.mrf.mxu3 }
 0x1b1   : > { %v1554_v38 = vpop.f32.mrf.mxu0 }
 0x1b2   : > { %v1687_v57 = vadd.f32 %v1686_v12, %v1678_v26  ;;  %v1569_v28 = vadd.f32 %v1551_v48, %v1446_v30 }
 0x1b3   : > { %v1185_v34 = vpop.f32.mrf.mxu1 }
 0x1b4   : > { %v1583_v39 = vadd.f32 %v2752_v14, %v1569_v28  ;;  %v1201_v31 = vadd.f32 %v1185_v34, %v2717_v50 }
 0x1b6   : > { %v1653_v32 = vmul.f32 %v1626_v40, %v1583_v39  ;;  %v1324_v41 = vadd.f32 %v1308_v25, %v1201_v31 }
 0x1b8   : > { %v1662_v43 = vadd.f32 %v1661_v22, %v1653_v32  ;;  %v1679_v44 = vmul.f32 %v1653_v32, %v1653_v32  ;;  %1718 = vst [vmem:[%s2725_s18 + $0x33] sm:$0xff] %v1653_v32  ;;  %v1447_v54 = vadd.f32 %v1431_v53, %v1324_v41  ;;  %v1310_v59 = vpop.f32.mrf.mxu2  ;;  %v1436_v35 = vpop.f32.mrf.mxu3 }
 0x1b9   : > { %v1556_v52 = vpop.f32.mrf.mxu0  ;;  %v1646_v22 = vpop.permute.xlu1 %1645 }
 0x1ba   : > { %v1688_v2 = vadd.f32 %v1687_v57, %v1679_v44  ;;  %v1570_v11 = vadd.f32 %v1554_v38, %v1447_v54 }
 0x1bb   : > { %v1187_v46 = vpop.f32.mrf.mxu1 }
 0x1bc   : > { %v1584_v47 = vadd.f32 %v2752_v14, %v1570_v11  ;;  %v1202_v49 = vadd.f32 %v1187_v46, %v2728_v37 }
 0x1be   : > { %v1654_v50 = vmul.f32 %v1631_v51, %v1584_v47  ;;  %v1325_v16 = vadd.f32 %v1310_v59, %v1202_v49 }
 0x1c0   : > { %v1663_v55 = vadd.f32 %v1662_v43, %v1654_v50  ;;  %v1680_v29 = vmul.f32 %v1654_v50, %v1654_v50  ;;  %1719 = vst [vmem:[%s2725_s18 + $0x3b] sm:$0xff] %v1654_v50  ;;  %v1448_v13 = vadd.f32 %v1433_v45, %v1325_v16  ;;  %v1313_v60 = vpop.f32.mrf.mxu2  ;;  %v1438_v42 = vpop.f32.mrf.mxu3 }
 0x1c1   : > { %v1559_v0 = vpop.f32.mrf.mxu0 }
 0x1c2   : > { %v1689_v56 = vadd.f32 %v1688_v2, %v1680_v29  ;;  %v1571_v58 = vadd.f32 %v1556_v52, %v1448_v13 }
 0x1c3   : > { %v1190_v61 = vpop.f32.mrf.mxu1 }
 0x1c4   : > { %v1585_v62 = vadd.f32 %v2752_v14, %v1571_v58  ;;  %v1203_v23 = vadd.f32 %v1190_v61, %v2739_v1 }
 0x1c6   : > { %v1655_v37 = vmul.f32 %v1636_v27, %v1585_v62  ;;  %v1326_v63 = vadd.f32 %v1313_v60, %v1203_v23 }
 0x1c8   : > { %v1664_v4 = vadd.f32 %v1663_v55, %v1655_v37  ;;  %v1681_v5 = vmul.f32 %v1655_v37, %v1655_v37  ;;  %1720 = vst [vmem:[%s2725_s18 + $0x43] sm:$0xff] %v1655_v37  ;;  %v1449_v24 = vadd.f32 %v1436_v35, %v1326_v63  ;;  %v1315_v10 = vpop.f32.mrf.mxu2 }
 0x1c9   : > { %v1561_v18 = vpop.f32.mrf.mxu0 }
 0x1ca   : > { %v1690_v21 = vadd.f32 %v1689_v56, %v1681_v5  ;;  %v1572_v6 = vadd.f32 %v1559_v0, %v1449_v24 }
 0x1cb   : > { %v1192_v8 = vpop.f32.mrf.mxu1 }
 0x1cc   : > { %v1586_v3 = vadd.f32 %v2752_v14, %v1572_v6  ;;  %v1204_v7 = vadd.f32 %v1192_v8, %v2746_v17 }
 0x1ce   : > { %v1656_v1 = vmul.f32 %v1641_v9, %v1586_v3  ;;  %v1327_v12 = vadd.f32 %v1315_v10, %v1204_v7 }
 0x1d0   : > { %v1665_v48 = vadd.f32 %v1664_v4, %v1656_v1  ;;  %v1682_v33 = vmul.f32 %v1656_v1, %v1656_v1  ;;  %1721 = vst [vmem:[%s2725_s18 + $0x4b] sm:$0xff] %v1656_v1  ;;  %v1450_v15 = vadd.f32 %v1438_v42, %v1327_v12 }
 0x1d2   : > { %v1691_v19 = vadd.f32 %v1690_v21, %v1682_v33  ;;  %v1573_v36 = vadd.f32 %v1561_v18, %v1450_v15 }
 0x1d4   : > { %v1587_v20 = vadd.f32 %v2752_v14, %v1573_v36 }
 0x1d6   : > { %v1657_v26 = vmul.f32 %v1646_v22, %v1587_v20 }
 0x1d8   : > { %v1666_v30 = vadd.f32 %v1665_v48, %v1657_v26  ;;  %v1683_v17 = vmul.f32 %v1657_v26, %v1657_v26  ;;  %1722 = vst [vmem:[%s2725_s18 + $0x53] sm:$0xff] %v1657_v26 }
 0x1da   : > { %v1667_v53 = vrot.slane %v1666_v30, 4  ;;  %v1692_v25 = vadd.f32 %v1691_v19, %v1683_v17 }
 0x1dc   : > { %v1668_v57 = vadd.f32 %v1667_v53, %v1666_v30  ;;  %v1693_v28 = vrot.slane %v1692_v25, 4 }
 0x1de   : > { %v1669_v34 = vrot.slane %v1668_v57, 2  ;;  %v1694_v38 = vadd.f32 %v1693_v28, %v1692_v25 }
 0x1e0   : > { %v1670_v39 = vadd.f32 %v1669_v34, %v1668_v57  ;;  %v1695_v31 = vrot.slane %v1694_v38, 2 }
 0x1e2   : > { %v1671_v40 = vrot.slane %v1670_v39, 1  ;;  %v1696_v32 = vadd.f32 %v1695_v31, %v1694_v38 }
 0x1e4   : > { %v1672_v14 = vadd.f32 %v1671_v40, %v1670_v39  ;;  %v1697_v41 = vrot.slane %v1696_v32, 1 }
 0x1e6   : > { %1673 = vst [vmem:[%s319_s23] sm:$0x1] %v1672_v14  ;;  %v1698_v43 = vadd.f32 %v1697_v41, %v1696_v32 }
 0x1e8   : > { %1699 = vst [vmem:[%s322_s26] sm:$0x1] %v1698_v43 }
 0x1e9 PF: > { %s19_s27 = sadd.s32 1, %s2236_s27  }
 0x1ea   : > { %p16_p4 = scmp.ge.s32.totalorder %s19_s27, 4  }
 0x1ec   :  { %18 = sbr.rel (!%p16_p4) target bundleno = 1 (0x1), region = 98 }

</bundles_post_ra>
